<compile_context>
chip_gen: v5e
topology: v5e:2x2
jax: 0.10.0
libtpu: 0.0.40
codegen_flags: <defaults>
</compile_context>

<pallas_src>
import functools

import jax
import jax.numpy as jnp
from jax import lax
from jax.experimental import pallas as pl
from jax.experimental.pallas import tpu as pltpu

_LANE = 128                       # output-channel dims padded to this (lane-dense stores)
_TM_MAX = 512                     # max M-tile for the matmul-style kernels
_EPS = 1e-5                       # nn.BatchNorm2d default eps


def _derive_vmem_limit():
    """3/4 of physical VMEM, capped at 96 MiB (safe headroom on every gen)."""
    try:
        cap = int(pltpu.get_tpu_info().vmem_capacity_bytes)
        lim = min(96 * 1024 * 1024, (cap * 3) // 4)
        if lim >= 16 * 1024 * 1024:
            return lim
    except Exception:
        pass
    return 48 * 1024 * 1024


_VMEM_LIMIT = _derive_vmem_limit()


def _round_up(x, m):
    return ((x + m - 1) // m) * m


def _pick_tm(m, tm_max=_TM_MAX):
    """Largest M tile <= tm_max that keeps row-padding waste minimal."""
    if m <= tm_max:
        return max(8, _round_up(m, 8))
    best_tm, best_cost = tm_max, None
    for cand in range(tm_max, 63, -8):
        cost = _round_up(m, cand)
        if best_cost is None or cost < best_cost:
            best_tm, best_cost = cand, cost
        if cost == m:
            break
    return best_tm


def _pick_row_tile(hh, ww, target_pixels=2048):
    """Row tile for the 3x3 kernels: ~target_pixels output pixels per step."""
    tr = max(1, min(hh, target_pixels // max(ww, 1)))
    nt = -(-hh // tr)
    tr = -(-hh // nt)            # equalize tiles -> minimal bottom padding
    return tr, nt


def _compiler_params(n_parallel_axes):
    return pltpu.CompilerParams(
        dimension_semantics=("parallel",) * n_parallel_axes,
        vmem_limit_bytes=_VMEM_LIMIT,
    )


# ---------------------------------------------------------------------------
# Kernel 1: fused 1x1 stem + pool-branch 1x1 conv (two lane-dense outputs).
#   stem slab : [conv1x1 | conv3x3_1 | conv5x5_1](x[::2, ::2])  (shared LHS)
#   pool slab : pool_2(maxpool(x))
# Both are (M,K)@(K,128) + bias + ReLU; BN is folded into W/bias.
# ---------------------------------------------------------------------------
def _stem_pool_kernel(xs_ref, xp_ref, ws_ref, wp_ref, bs_ref, bp_ref,
                      os_ref, op_ref):
    s = jnp.dot(xs_ref[...], ws_ref[...], preferred_element_type=jnp.float32)
    os_ref[...] = jnp.maximum(s + bs_ref[...], 0.0).astype(os_ref.dtype)
    p = jnp.dot(xp_ref[...], wp_ref[...], preferred_element_type=jnp.float32)
    op_ref[...] = jnp.maximum(p + bp_ref[...], 0.0).astype(op_ref.dtype)


def stem_pool(xs, xp, w_stem, b_stem, w_pool, b_pool):
    m, k = xs.shape
    kp = _round_up(k, 8)
    ocs = w_stem.shape[1]
    ocp = w_pool.shape[1]
    tm = _pick_tm(m)
    m_pad = _round_up(m, tm)

    def pad_a(a):
        return jnp.pad(a.astype(jnp.bfloat16), ((0, m_pad - m), (0, kp - k)))

    def pad_w(wt):
        return jnp.pad(wt.astype(jnp.bfloat16), ((0, kp - k), (0, 0)))

    outs = pl.pallas_call(
        _stem_pool_kernel,
        out_shape=(jax.ShapeDtypeStruct((m_pad, ocs), jnp.bfloat16),
                   jax.ShapeDtypeStruct((m_pad, ocp), jnp.bfloat16)),
        grid_spec=pltpu.PrefetchScalarGridSpec(
            num_scalar_prefetch=0,
            grid=(m_pad // tm,),
            in_specs=[
                pl.BlockSpec((tm, kp), lambda i: (i, 0)),
                pl.BlockSpec((tm, kp), lambda i: (i, 0)),
                pl.BlockSpec((kp, ocs), lambda i: (0, 0)),
                pl.BlockSpec((kp, ocp), lambda i: (0, 0)),
                pl.BlockSpec((1, ocs), lambda i: (0, 0)),
                pl.BlockSpec((1, ocp), lambda i: (0, 0)),
            ],
            out_specs=(pl.BlockSpec((tm, ocs), lambda i: (i, 0)),
                       pl.BlockSpec((tm, ocp), lambda i: (i, 0))),
        ),
        compiler_params=_compiler_params(1),
    )(pad_a(xs), pad_a(xp), pad_w(w_stem), pad_w(w_pool),
      b_stem.astype(jnp.float32).reshape(1, ocs),
      b_pool.astype(jnp.float32).reshape(1, ocp))
    return outs[0][:m], outs[1][:m]


# ---------------------------------------------------------------------------
# Kernel 2: 3x3 / stride-1 / pad-1 conv (+folded BN +ReLU), implicit GEMM.
#
# Wrapper packs the three dj taps into the lane dim (channels -> 3*C) and
# flattens the halo-padded row tile spatially, so the kernel only needs three
# row-shifted, lane-dense matmuls of K=3*C per tile (vs nine K=C matmuls).
# Spatially row-tiled: grid=(n, nt) keeps VMEM bounded and megacore-parallel.
# ---------------------------------------------------------------------------
def _conv3x3_kernel(x_ref, w_ref, b_ref, o_ref, *, rows, ow):
    # x_ref: (1, 1, (tr+2)*ow, 3c) ; w_ref: (3, 3c, ocp) ; rows = tr*ow.
    acc = jnp.dot(x_ref[0, 0, 0:rows, :], w_ref[0],
                  preferred_element_type=jnp.float32)
    acc = acc + jnp.dot(x_ref[0, 0, ow:ow + rows, :], w_ref[1],
                        preferred_element_type=jnp.float32)
    acc = acc + jnp.dot(x_ref[0, 0, 2 * ow:2 * ow + rows, :], w_ref[2],
                        preferred_element_type=jnp.float32)
    y = jnp.maximum(acc + b_ref[...], 0.0)
    o_ref[0, 0] = y.astype(o_ref.dtype)


def conv3x3_gemm(x_nhwc, w3tap, bias, *, out_dtype=jnp.bfloat16):
    """x: (n,H,W,C); w3tap: (3, 3*C, OCp) with per-di rows ordered (dj, ci);
    bias: (OCp,).  Returns (n, H, W, OCp) lane-dense bf16."""
    n, hh, ww, c = x_nhwc.shape
    ocp = w3tap.shape[2]
    tr, nt = _pick_row_tile(hh, ww)
    hp = nt * tr

    # Halo pad (top 1 / bottom 1 + fill-to-tile / left-right 1).  Fill rows are
    # zero; their outputs are junk and sliced off below.
    xpad = jnp.pad(x_nhwc.astype(jnp.bfloat16),
                   ((0, 0), (1, 1 + hp - hh), (1, 1), (0, 0)))
    # Pack the three dj taps along channels -> (n, hp+2, W, 3C).
    xw = jnp.concatenate([xpad[:, :, 0:ww, :],
                          xpad[:, :, 1:ww + 1, :],
                          xpad[:, :, 2:ww + 2, :]], axis=-1)
    # Overlapping row tiles (tr+2 rows each), spatially flattened per tile so
    # the kernel only slices the sublane (row) dim.
    tiles = jnp.stack([xw[:, t * tr:t * tr + tr + 2] for t in range(nt)],
                      axis=1)
    tiles = tiles.reshape(n, nt, (tr + 2) * ww, 3 * c)

    out = pl.pallas_call(
        functools.partial(_conv3x3_kernel, rows=tr * ww, ow=ww),
        out_shape=jax.ShapeDtypeStruct((n, nt, tr * ww, ocp), out_dtype),
        grid_spec=pltpu.PrefetchScalarGridSpec(
            num_scalar_prefetch=0,
            grid=(n, nt),
            in_specs=[
                pl.BlockSpec((1, 1, (tr + 2) * ww, 3 * c),
                             lambda b, t: (b, t, 0, 0)),
                pl.BlockSpec((3, 3 * c, ocp), lambda b, t: (0, 0, 0)),
                pl.BlockSpec((1, ocp), lambda b, t: (0, 0)),
            ],
            out_specs=pl.BlockSpec((1, 1, tr * ww, ocp),
                                   lambda b, t: (b, t, 0, 0)),
        ),
        compiler_params=_compiler_params(2),
    )(tiles, w3tap.astype(jnp.bfloat16),
      bias.astype(jnp.float32).reshape(1, ocp))

    out = out.reshape(n, hp, ww, ocp)
    if hp != hh:
        out = out[:, :hh]
    return out


# ---------------------------------------------------------------------------
# Kernel 3: fused outlayer (1x1 over the channel concat) + skip conv + add:
#   out = relu(sum_i branch_i @ Wo_i + b_out) + xs @ W_skip + b_skip
# The branch partial matmuls replace the HBM channel concat.  Correctness does
# NOT rely on branch lane-padding being zero: every weight row that maps to a
# padded / intermediate channel (t3, t5, mid5, lane pads) is explicitly zero.
# ---------------------------------------------------------------------------
def _outlayer_skip_kernel(s_ref, y3s_ref, y5s_ref, p_ref, xs_ref,
                          w1_ref, w2_ref, w3_ref, w4_ref, wsk_ref,
                          bo_ref, bs_ref, o_ref):
    acc = jnp.dot(s_ref[...], w1_ref[...], preferred_element_type=jnp.float32)
    acc = acc + jnp.dot(y3s_ref[...], w2_ref[...], preferred_element_type=jnp.float32)
    acc = acc + jnp.dot(y5s_ref[...], w3_ref[...], preferred_element_type=jnp.float32)
    acc = acc + jnp.dot(p_ref[...], w4_ref[...], preferred_element_type=jnp.float32)
    y = jnp.maximum(acc + bo_ref[...], 0.0)
    skip = jnp.dot(xs_ref[...], wsk_ref[...], preferred_element_type=jnp.float32)
    o_ref[...] = (y + skip + bs_ref[...]).astype(o_ref.dtype)


def outlayer_skip(branches, branch_weights, b_out, xs, w_skip, b_skip):
    m = branches[0].shape[0]
    ocp = branch_weights[0].shape[1]
    cin = xs.shape[1]
    kp = _round_up(cin, 8)
    tm = _pick_tm(m)
    m_pad = _round_up(m, tm)

    def pad_rows(t):
        return jnp.pad(t.astype(jnp.bfloat16), ((0, m_pad - m), (0, 0)))

    xs_p = jnp.pad(xs.astype(jnp.bfloat16), ((0, m_pad - m), (0, kp - cin)))
    wsk_p = jnp.pad(w_skip.astype(jnp.bfloat16), ((0, kp - cin), (0, 0)))

    data = [pad_rows(t) for t in branches] + [xs_p]
    weights = [wb.astype(jnp.bfloat16) for wb in branch_weights] + [wsk_p]
    widths = [t.shape[1] for t in data]

    in_specs = (
        [pl.BlockSpec((tm, wd), lambda i: (i, 0)) for wd in widths]
        + [pl.BlockSpec((wd, ocp), lambda i: (0, 0)) for wd in widths]
        + [pl.BlockSpec((1, ocp), lambda i: (0, 0))] * 2
    )

    out = pl.pallas_call(
        _outlayer_skip_kernel,
        out_shape=jax.ShapeDtypeStruct((m_pad, ocp), jnp.float32),
        grid_spec=pltpu.PrefetchScalarGridSpec(
            num_scalar_prefetch=0,
            grid=(m_pad // tm,),
            in_specs=in_specs,
            out_specs=pl.BlockSpec((tm, ocp), lambda i: (i, 0)),
        ),
        compiler_params=_compiler_params(1),
    )(*data, *weights,
      b_out.astype(jnp.float32).reshape(1, ocp),
      b_skip.astype(jnp.float32).reshape(1, ocp))
    return out[:m]


# ---------------------------------------------------------------------------
# BN folding helpers
# ---------------------------------------------------------------------------
def _fold_bn(w_oihw, gamma, beta, mean, var):
    scale = gamma * lax.rsqrt(var + _EPS)
    return w_oihw * scale[:, None, None, None], beta - mean * scale


def _fold_bn_1x1(w_oihw, gamma, beta, mean, var):
    wf, bf = _fold_bn(w_oihw, gamma, beta, mean, var)
    return jnp.transpose(wf[:, :, 0, 0], (1, 0)), bf       # (Cin, OC), (OC,)


def _tap3_matrix(w_folded_oihw):
    """Folded OIHW 3x3 weight -> (3, 3*Cin, OC); per-di rows ordered (dj, ci)
    to match the dj-packed input channel layout of conv3x3_gemm."""
    oc, ci = w_folded_oihw.shape[0], w_folded_oihw.shape[1]
    return jnp.transpose(w_folded_oihw, (2, 3, 1, 0)).reshape(3, 3 * ci, oc)


# ---------------------------------------------------------------------------
# Full module forward
# ---------------------------------------------------------------------------
@jax.jit
def inception_pva_v2_forward(x_nchw, params):
    n, cin, h, w = x_nchw.shape
    oh = (h - 1) // 2 + 1
    ow = (w - 1) // 2 + 1
    m = n * oh * ow

    x_nhwc = jnp.transpose(x_nchw, (0, 2, 3, 1))
    xs_flat = x_nhwc[:, ::2, ::2, :].reshape(m, cin)   # 1x1 stride-2 == subsample

    # ---- pool branch input: MaxPool2d(3,2,1) as XLA glue ----
    # TODO(synk): MaxPool stays as lax.reduce_window (lane-sparse C=4); folding
    # it into a Pallas kernel is possible but low value for this small op.
    pooled_flat = lax.reduce_window(
        x_nhwc, -jnp.inf, lax.max,
        window_dimensions=(1, 3, 3, 1), window_strides=(1, 2, 2, 1),
        padding=((0, 0), (1, 1), (1, 1), (0, 0))).reshape(m, cin)

    # ---- fold eval-mode BN into all conv weights ----
    w1, b1 = _fold_bn_1x1(*params["conv1x1"])
    w3a, b3a = _fold_bn_1x1(*params["conv3x3_1"])
    w5a, b5a = _fold_bn_1x1(*params["conv5x5_1"])
    wpl, bpl = _fold_bn_1x1(*params["pool_2"])
    c1, c3a, c5a, c4 = w1.shape[1], w3a.shape[1], w5a.shape[1], wpl.shape[1]

    stem_w = _round_up(c1 + c3a + c5a, _LANE)
    pool_w = _round_up(c4, _LANE)
    w_stem = jnp.pad(jnp.concatenate([w1, w3a, w5a], axis=1),
                     ((0, 0), (0, stem_w - (c1 + c3a + c5a))))
    b_stem = jnp.pad(jnp.concatenate([b1, b3a, b5a]),
                     (0, stem_w - (c1 + c3a + c5a)))
    w_pool = jnp.pad(wpl, ((0, 0), (0, pool_w - c4)))
    b_pool = jnp.pad(bpl, (0, pool_w - c4))

    # ---- kernel 1: fused 1x1 stem (+ pool 1x1 conv) ----
    stem_slab, pool_slab = stem_pool(xs_flat, pooled_flat,
                                     w_stem, b_stem, w_pool, b_pool)

    # ---- kernel 2: conv3x3_2(t3) and conv5x5_2(t5) fused (shared input grid,
    #      block-diagonal weight: output cols [y3 | mid5]) ----
    cc = c3a + c5a
    t35 = stem_slab[:, c1:c1 + cc].reshape(n, oh, ow, cc)

    w32f, b32f = _fold_bn(*params["conv3x3_2"])        # (c32, c3a, 3, 3)
    w52f, b52f = _fold_bn(*params["conv5x5_2"])        # (c52, c5a, 3, 3)
    c32, c52 = w32f.shape[0], w52f.shape[0]
    s1_w = _round_up(c32 + c52, _LANE)
    w32t = jnp.transpose(w32f, (2, 3, 1, 0))           # (3,3,c3a,c32)
    w52t = jnp.transpose(w52f, (2, 3, 1, 0))           # (3,3,c5a,c52)
    top = jnp.concatenate([w32t, jnp.zeros((3, 3, c3a, c52), w32t.dtype)], -1)
    bot = jnp.concatenate([jnp.zeros((3, 3, c5a, c32), w52t.dtype), w52t], -1)
    w_s1 = jnp.concatenate([top, bot], axis=2).reshape(3, 3 * cc, c32 + c52)
    w_s1 = jnp.pad(w_s1, ((0, 0), (0, 0), (0, s1_w - (c32 + c52))))
    b_s1 = jnp.pad(jnp.concatenate([b32f, b52f]), (0, s1_w - (c32 + c52)))

    s1 = conv3x3_gemm(t35, w_s1, b_s1)                 # (n,oh,ow,s1_w): [y3|mid5|0]

    # ---- kernel 2': conv5x5_3(mid5) ----
    # TODO(synk): conv5x5_2 -> conv5x5_3 not fused into one pallas_call (would
    # need in-VMEM halo recompute of the intermediate); kept as a second
    # row-tiled implicit-GEMM call.
    w53f, b53f = _fold_bn(*params["conv5x5_3"])        # (c53, c52, 3, 3)
    c53 = w53f.shape[0]
    y5_w = _round_up(c53, _LANE)
    w_s2 = jnp.pad(_tap3_matrix(w53f), ((0, 0), (0, 0), (0, y5_w - c53)))
    b_s2 = jnp.pad(b53f, (0, y5_w - c53))
    mid5 = s1[..., c32:c32 + c52]
    y5 = conv3x3_gemm(mid5, w_s2, b_s2)                # (n,oh,ow,y5_w): [y5|0]

    # ---- kernel 3: fused outlayer + skip + residual ----
    wo, go, bo, mo, vo = params["outlayer"]
    oc_out = wo.shape[0]
    ocp = _round_up(oc_out, _LANE)
    scale_o = go * lax.rsqrt(vo + _EPS)
    wo_mat = jnp.transpose(wo[:, :, 0, 0] * scale_o[:, None], (1, 0))
    wo_mat = jnp.pad(wo_mat, ((0, 0), (0, ocp - oc_out)))      # (Kcat, ocp)
    b_out = jnp.pad(bo - mo * scale_o, (0, ocp - oc_out))

    # torch.cat order: (y1 | y3 | y5 | y4).  Embed each branch's weight rows at
    # its real-channel offsets in that branch's lane-padded slab; every other
    # row (t3/t5 inside the stem slab, mid5 inside s1, lane pads) is ZERO, so
    # intermediate / padded lanes can never leak into the output.
    r1 = wo_mat[:c1]
    r3 = wo_mat[c1:c1 + c32]
    r5 = wo_mat[c1 + c32:c1 + c32 + c53]
    r4 = wo_mat[c1 + c32 + c53:c1 + c32 + c53 + c4]
    W1 = jnp.zeros((stem_w, ocp), wo_mat.dtype).at[:c1].set(r1)
    W2 = jnp.zeros((s1_w, ocp), wo_mat.dtype).at[:c32].set(r3)
    W3 = jnp.zeros((y5_w, ocp), wo_mat.dtype).at[:c53].set(r5)
    W4 = jnp.zeros((pool_w, ocp), wo_mat.dtype).at[:c4].set(r4)

    wsk, bsk = params["skip"]
    wsk_mat = jnp.pad(jnp.transpose(wsk[:, :, 0, 0], (1, 0)),
                      ((0, 0), (0, ocp - oc_out)))
    bsk_p = jnp.pad(bsk, (0, ocp - oc_out))

    out_flat = outlayer_skip(
        [stem_slab, s1.reshape(m, s1_w), y5.reshape(m, y5_w), pool_slab],
        [W1, W2, W3, W4], b_out, xs_flat, wsk_mat, bsk_p)

    # Single slice + NHWC->NCHW transpose at the very end (one relayout copy).
    out = out_flat[:, :oc_out].reshape(n, oh, ow, oc_out)
    return jnp.transpose(out, (0, 3, 1, 2))


# ---------------------------------------------------------------------------
# Pure-JAX reference (mirrors the PyTorch module in f32)
# ---------------------------------------------------------------------------
def _conv_bn_relu_ref(x, wt, gamma, beta, mean, var, stride, padding):
    y = lax.conv_general_dilated(
        x, wt, window_strides=(stride, stride),
        padding=[(padding, padding), (padding, padding)],
        dimension_numbers=("NCHW", "OIHW", "NCHW"))
    scale = (gamma * lax.rsqrt(var + _EPS)).reshape(1, -1, 1, 1)
    bias = (beta - mean * gamma * lax.rsqrt(var + _EPS)).reshape(1, -1, 1, 1)
    return jnp.maximum(y * scale + bias, 0.0)


def _reference(x, params):
    p = params
    y1 = _conv_bn_relu_ref(x, *p["conv1x1"], stride=2, padding=0)
    y3 = _conv_bn_relu_ref(x, *p["conv3x3_1"], stride=2, padding=0)
    y3 = _conv_bn_relu_ref(y3, *p["conv3x3_2"], stride=1, padding=1)
    y5 = _conv_bn_relu_ref(x, *p["conv5x5_1"], stride=2, padding=0)
    y5 = _conv_bn_relu_ref(y5, *p["conv5x5_2"], stride=1, padding=1)
    y5 = _conv_bn_relu_ref(y5, *p["conv5x5_3"], stride=1, padding=1)
    pooled = lax.reduce_window(x, -jnp.inf, lax.max,
                               (1, 1, 3, 3), (1, 1, 2, 2),
                               ((0, 0), (0, 0), (1, 1), (1, 1)))
    y4 = _conv_bn_relu_ref(pooled, *p["pool_2"], stride=1, padding=0)
    ycat = jnp.concatenate([y1, y3, y5, y4], axis=1)
    y = _conv_bn_relu_ref(ycat, *p["outlayer"], stride=1, padding=0)
    wsk, bsk = p["skip"]
    skip = lax.conv_general_dilated(x, wsk, (2, 2), [(0, 0), (0, 0)],
                                    dimension_numbers=("NCHW", "OIHW", "NCHW"))
    return y + skip + bsk.reshape(1, -1, 1, 1)


def _make_cbr_params(key, ic, oc, kh, kw):
    k1, k2, k3, k4, k5 = jax.random.split(key, 5)
    wt = 0.1 * jax.random.normal(k1, (oc, ic, kh, kw), jnp.float32)
    gamma = 1.0 + 0.1 * jax.random.normal(k2, (oc,), jnp.float32)
    beta = 0.1 * jax.random.normal(k3, (oc,), jnp.float32)
    mean = 0.1 * jax.random.normal(k4, (oc,), jnp.float32)
    var = jnp.abs(jax.random.normal(k5, (oc,), jnp.float32)) + 0.5
    return (wt, gamma, beta, mean, var)


if __name__ == "__main__":
    N, C_IN, H, W = 2, 4, 16, 16
    MID_3X3_1, MID_3X3_2 = 8, 16
    MID_5X5_1, MID_5X5_2 = 8, 16
    OUT_CHANNELS = 32

    key = jax.random.PRNGKey(0)
    keys = jax.random.split(key, 11)

    x = jax.random.normal(keys[0], (N, C_IN, H, W), jnp.float32)
    cat_ch = 64 + MID_3X3_2 + MID_5X5_2 + 128
    params = {
        "conv1x1":   _make_cbr_params(keys[1], C_IN, 64, 1, 1),
        "conv3x3_1": _make_cbr_params(keys[2], C_IN, MID_3X3_1, 1, 1),
        "conv3x3_2": _make_cbr_params(keys[3], MID_3X3_1, MID_3X3_2, 3, 3),
        "conv5x5_1": _make_cbr_params(keys[4], C_IN, MID_5X5_1, 1, 1),
        "conv5x5_2": _make_cbr_params(keys[5], MID_5X5_1, MID_5X5_2, 3, 3),
        "conv5x5_3": _make_cbr_params(keys[6], MID_5X5_2, MID_5X5_2, 3, 3),
        "pool_2":    _make_cbr_params(keys[7], C_IN, 128, 1, 1),
        "outlayer":  _make_cbr_params(keys[8], cat_ch, OUT_CHANNELS, 1, 1),
        "skip": (0.1 * jax.random.normal(keys[9], (OUT_CHANNELS, C_IN, 1, 1), jnp.float32),
                 0.1 * jax.random.normal(keys[10], (OUT_CHANNELS,), jnp.float32)),
    }

    out = inception_pva_v2_forward(x, params)
    out = jax.block_until_ready(out)

    ref = _reference(x, params)
    assert out.shape == (N, OUT_CHANNELS, H // 2, W // 2), out.shape
    err = float(jnp.max(jnp.abs(out - ref)))
    # bf16 matmul inputs (f32 accumulation) -> loosened tolerance vs f32 reference.
    assert err < 1e-1, f"max abs error {err} vs f32 reference"

    print("KERNEL_OK")
</pallas_src>

<mosaic_0001>
module attributes {stable_mosaic.version = 11 : i64} {
  func.func @_stem_pool_kernel(%arg0: i32, %arg1: memref<128x8xbf16, #tpu.memory_space<vmem>>, %arg2: memref<128x8xbf16, #tpu.memory_space<vmem>>, %arg3: memref<8x128xbf16, #tpu.memory_space<vmem>>, %arg4: memref<8x128xbf16, #tpu.memory_space<vmem>>, %arg5: memref<1x128xf32, #tpu.memory_space<vmem>>, %arg6: memref<1x128xf32, #tpu.memory_space<vmem>>, %arg7: memref<128x128xbf16, #tpu.memory_space<vmem>>, %arg8: memref<128x128xbf16, #tpu.memory_space<vmem>>) attributes {dimension_semantics = [#tpu.dimension_semantics<parallel>], iteration_bounds = array<i64: 1>, scalar_prefetch = 0 : i64, scratch_operands = 0 : i64, tpu.core_type = #tpu.core_type<tc>, window_params = [{transform_indices = @transform_0, window_bounds = array<i64: 128, 8>}, {transform_indices = @transform_1, window_bounds = array<i64: 128, 8>}, {pipeline_mode = #tpu.pipeline_mode<synchronous>, transform_indices = @transform_2, window_bounds = array<i64: 8, 128>}, {pipeline_mode = #tpu.pipeline_mode<synchronous>, transform_indices = @transform_3, window_bounds = array<i64: 8, 128>}, {pipeline_mode = #tpu.pipeline_mode<synchronous>, transform_indices = @transform_4, window_bounds = array<i64: 1, 128>}, {pipeline_mode = #tpu.pipeline_mode<synchronous>, transform_indices = @transform_5, window_bounds = array<i64: 1, 128>}, {transform_indices = @transform_6, window_bounds = array<i64: 128, 128>}, {transform_indices = @transform_7, window_bounds = array<i64: 128, 128>}]} {
    %c0 = arith.constant 0 : index
    %c0_0 = arith.constant 0 : index
    %0 = vector.load %arg1[%c0, %c0_0] : memref<128x8xbf16, #tpu.memory_space<vmem>>, vector<128x8xbf16>
    %c0_1 = arith.constant 0 : index
    %c0_2 = arith.constant 0 : index
    %1 = vector.load %arg3[%c0_1, %c0_2] : memref<8x128xbf16, #tpu.memory_space<vmem>>, vector<8x128xbf16>
    %cst = arith.constant dense<0.000000e+00> : vector<128x128xf32>
    %2 = tpu.matmul %0, %1, %cst {dimension_numbers = #tpu.dot_dimension_numbers<[1], [0], [0], [1], [0, 0, 1, 1], [], []>} : vector<128x8xbf16>, vector<8x128xbf16>, vector<128x128xf32> -> vector<128x128xf32>
    %c0_3 = arith.constant 0 : index
    %c0_4 = arith.constant 0 : index
    %3 = vector.load %arg5[%c0_3, %c0_4] : memref<1x128xf32, #tpu.memory_space<vmem>>, vector<1x128xf32>
    %4 = vector.broadcast %3 : vector<1x128xf32> to vector<128x128xf32>
    %5 = arith.addf %2, %4 : vector<128x128xf32>
    %cst_5 = arith.constant 0.000000e+00 : f32
    %6 = vector.broadcast %cst_5 : f32 to vector<128x128xf32>
    %7 = arith.maximumf %5, %6 : vector<128x128xf32>
    %8 = arith.truncf %7 : vector<128x128xf32> to vector<128x128xbf16>
    %c0_6 = arith.constant 0 : index
    %c0_7 = arith.constant 0 : index
    %9 = vector.load %arg7[%c0_6, %c0_7] : memref<128x128xbf16, #tpu.memory_space<vmem>>, vector<128x128xbf16>
    tpu.vector_store %arg7[%c0_6, %c0_7], %8 {strides = array<i32>} : memref<128x128xbf16, #tpu.memory_space<vmem>>, vector<128x128xbf16>,
    %c0_8 = arith.constant 0 : index
    %c0_9 = arith.constant 0 : index
    %10 = vector.load %arg2[%c0_8, %c0_9] : memref<128x8xbf16, #tpu.memory_space<vmem>>, vector<128x8xbf16>
    %c0_10 = arith.constant 0 : index
    %c0_11 = arith.constant 0 : index
    %11 = vector.load %arg4[%c0_10, %c0_11] : memref<8x128xbf16, #tpu.memory_space<vmem>>, vector<8x128xbf16>
    %cst_12 = arith.constant dense<0.000000e+00> : vector<128x128xf32>
    %12 = tpu.matmul %10, %11, %cst_12 {dimension_numbers = #tpu.dot_dimension_numbers<[1], [0], [0], [1], [0, 0, 1, 1], [], []>} : vector<128x8xbf16>, vector<8x128xbf16>, vector<128x128xf32> -> vector<128x128xf32>
    %c0_13 = arith.constant 0 : index
    %c0_14 = arith.constant 0 : index
    %13 = vector.load %arg6[%c0_13, %c0_14] : memref<1x128xf32, #tpu.memory_space<vmem>>, vector<1x128xf32>
    %14 = vector.broadcast %13 : vector<1x128xf32> to vector<128x128xf32>
    %15 = arith.addf %12, %14 : vector<128x128xf32>
    %cst_15 = arith.constant 0.000000e+00 : f32
    %16 = vector.broadcast %cst_15 : f32 to vector<128x128xf32>
    %17 = arith.maximumf %15, %16 : vector<128x128xf32>
    %18 = arith.truncf %17 : vector<128x128xf32> to vector<128x128xbf16>
    %c0_16 = arith.constant 0 : index
    %c0_17 = arith.constant 0 : index
    %19 = vector.load %arg8[%c0_16, %c0_17] : memref<128x128xbf16, #tpu.memory_space<vmem>>, vector<128x128xbf16>
    tpu.vector_store %arg8[%c0_16, %c0_17], %18 {strides = array<i32>} : memref<128x128xbf16, #tpu.memory_space<vmem>>, vector<128x128xbf16>,
    return
  }
  func.func @transform_0(%arg0: i32) -> (i32, i32) {
    %c0_i32 = arith.constant 0 : i32
    %c0_i32_0 = arith.constant 0 : i32
    return %arg0, %c0_i32 : i32, i32
  }
  func.func @transform_1(%arg0: i32) -> (i32, i32) {
    %c0_i32 = arith.constant 0 : i32
    %c0_i32_0 = arith.constant 0 : i32
    return %arg0, %c0_i32 : i32, i32
  }
  func.func @transform_2(%arg0: i32) -> (i32, i32) {
    %c0_i32 = arith.constant 0 : i32
    %c0_i32_0 = arith.constant 0 : i32
    %c0_i32_1 = arith.constant 0 : i32
    return %c0_i32, %c0_i32_0 : i32, i32
  }
  func.func @transform_3(%arg0: i32) -> (i32, i32) {
    %c0_i32 = arith.constant 0 : i32
    %c0_i32_0 = arith.constant 0 : i32
    %c0_i32_1 = arith.constant 0 : i32
    return %c0_i32, %c0_i32_0 : i32, i32
  }
  func.func @transform_4(%arg0: i32) -> (i32, i32) {
    %c0_i32 = arith.constant 0 : i32
    %c0_i32_0 = arith.constant 0 : i32
    %c0_i32_1 = arith.constant 0 : i32
    return %c0_i32, %c0_i32_0 : i32, i32
  }
  func.func @transform_5(%arg0: i32) -> (i32, i32) {
    %c0_i32 = arith.constant 0 : i32
    %c0_i32_0 = arith.constant 0 : i32
    %c0_i32_1 = arith.constant 0 : i32
    return %c0_i32, %c0_i32_0 : i32, i32
  }
  func.func @transform_6(%arg0: i32) -> (i32, i32) {
    %c0_i32 = arith.constant 0 : i32
    %c0_i32_0 = arith.constant 0 : i32
    return %arg0, %c0_i32 : i32, i32
  }
  func.func @transform_7(%arg0: i32) -> (i32, i32) {
    %c0_i32 = arith.constant 0 : i32
    %c0_i32_0 = arith.constant 0 : i32
    return %arg0, %c0_i32 : i32, i32
  }
}

module attributes {stable_mosaic.version = 11 : i64} {
  func.func @_conv3x3_kernel(%arg0: i32, %arg1: i32, %arg2: memref<1x1x80x48xbf16, #tpu.memory_space<vmem>>, %arg3: memref<3x48x128xbf16, #tpu.memory_space<vmem>>, %arg4: memref<1x128xf32, #tpu.memory_space<vmem>>, %arg5: memref<1x1x64x128xbf16, #tpu.memory_space<vmem>>) attributes {dimension_semantics = [#tpu.dimension_semantics<parallel>, #tpu.dimension_semantics<parallel>], iteration_bounds = array<i64: 2, 1>, scalar_prefetch = 0 : i64, scratch_operands = 0 : i64, tpu.core_type = #tpu.core_type<tc>, window_params = [{transform_indices = @transform_0, window_bounds = array<i64: 1, 1, 80, 48>}, {pipeline_mode = #tpu.pipeline_mode<synchronous>, transform_indices = @transform_1, window_bounds = array<i64: 3, 48, 128>}, {pipeline_mode = #tpu.pipeline_mode<synchronous>, transform_indices = @transform_2, window_bounds = array<i64: 1, 128>}, {transform_indices = @transform_3, window_bounds = array<i64: 1, 1, 64, 128>}]} {
    %c0 = arith.constant 0 : index
    %c0_0 = arith.constant 0 : index
    %c0_1 = arith.constant 0 : index
    %c0_2 = arith.constant 0 : index
    %0 = vector.load %arg2[%c0, %c0_0, %c0_1, %c0_2] : memref<1x1x80x48xbf16, #tpu.memory_space<vmem>>, vector<1x1x64x48xbf16>
    %1 = vector.shape_cast %0 : vector<1x1x64x48xbf16> to vector<64x48xbf16>
    %c0_3 = arith.constant 0 : index
    %c0_4 = arith.constant 0 : index
    %c0_5 = arith.constant 0 : index
    %2 = vector.load %arg3[%c0_3, %c0_4, %c0_5] : memref<3x48x128xbf16, #tpu.memory_space<vmem>>, vector<1x48x128xbf16>
    %3 = vector.shape_cast %2 : vector<1x48x128xbf16> to vector<48x128xbf16>
    %cst = arith.constant dense<0.000000e+00> : vector<64x128xf32>
    %4 = tpu.matmul %1, %3, %cst {dimension_numbers = #tpu.dot_dimension_numbers<[1], [0], [0], [1], [0, 0, 1, 1], [], []>} : vector<64x48xbf16>, vector<48x128xbf16>, vector<64x128xf32> -> vector<64x128xf32>
    %c0_6 = arith.constant 0 : index
    %c0_7 = arith.constant 0 : index
    %c8 = arith.constant 8 : index
    %c0_8 = arith.constant 0 : index
    %5 = vector.load %arg2[%c0_6, %c0_7, %c8, %c0_8] : memref<1x1x80x48xbf16, #tpu.memory_space<vmem>>, vector<1x1x64x48xbf16>
    %6 = vector.shape_cast %5 : vector<1x1x64x48xbf16> to vector<64x48xbf16>
    %c1 = arith.constant 1 : index
    %c0_9 = arith.constant 0 : index
    %c0_10 = arith.constant 0 : index
    %7 = vector.load %arg3[%c1, %c0_9, %c0_10] : memref<3x48x128xbf16, #tpu.memory_space<vmem>>, vector<1x48x128xbf16>
    %8 = vector.shape_cast %7 : vector<1x48x128xbf16> to vector<48x128xbf16>
    %cst_11 = arith.constant dense<0.000000e+00> : vector<64x128xf32>
    %9 = tpu.matmul %6, %8, %cst_11 {dimension_numbers = #tpu.dot_dimension_numbers<[1], [0], [0], [1], [0, 0, 1, 1], [], []>} : vector<64x48xbf16>, vector<48x128xbf16>, vector<64x128xf32> -> vector<64x128xf32>
    %10 = arith.addf %4, %9 : vector<64x128xf32>
    %c0_12 = arith.constant 0 : index
    %c0_13 = arith.constant 0 : index
    %c16 = arith.constant 16 : index
    %c0_14 = arith.constant 0 : index
    %11 = vector.load %arg2[%c0_12, %c0_13, %c16, %c0_14] : memref<1x1x80x48xbf16, #tpu.memory_space<vmem>>, vector<1x1x64x48xbf16>
    %12 = vector.shape_cast %11 : vector<1x1x64x48xbf16> to vector<64x48xbf16>
    %c2 = arith.constant 2 : index
    %c0_15 = arith.constant 0 : index
    %c0_16 = arith.constant 0 : index
    %13 = vector.load %arg3[%c2, %c0_15, %c0_16] : memref<3x48x128xbf16, #tpu.memory_space<vmem>>, vector<1x48x128xbf16>
    %14 = vector.shape_cast %13 : vector<1x48x128xbf16> to vector<48x128xbf16>
    %cst_17 = arith.constant dense<0.000000e+00> : vector<64x128xf32>
    %15 = tpu.matmul %12, %14, %cst_17 {dimension_numbers = #tpu.dot_dimension_numbers<[1], [0], [0], [1], [0, 0, 1, 1], [], []>} : vector<64x48xbf16>, vector<48x128xbf16>, vector<64x128xf32> -> vector<64x128xf32>
    %16 = arith.addf %10, %15 : vector<64x128xf32>
    %c0_18 = arith.constant 0 : index
    %c0_19 = arith.constant 0 : index
    %17 = vector.load %arg4[%c0_18, %c0_19] : memref<1x128xf32, #tpu.memory_space<vmem>>, vector<1x128xf32>
    %18 = vector.broadcast %17 : vector<1x128xf32> to vector<64x128xf32>
    %19 = arith.addf %16, %18 : vector<64x128xf32>
    %cst_20 = arith.constant 0.000000e+00 : f32
    %20 = vector.broadcast %cst_20 : f32 to vector<64x128xf32>
    %21 = arith.maximumf %19, %20 : vector<64x128xf32>
    %22 = arith.truncf %21 : vector<64x128xf32> to vector<64x128xbf16>
    %c0_21 = arith.constant 0 : index
    %c0_22 = arith.constant 0 : index
    %c0_23 = arith.constant 0 : index
    %c0_24 = arith.constant 0 : index
    %23 = vector.load %arg5[%c0_21, %c0_22, %c0_23, %c0_24] : memref<1x1x64x128xbf16, #tpu.memory_space<vmem>>, vector<1x1x64x128xbf16>
    %24 = vector.shape_cast %23 : vector<1x1x64x128xbf16> to vector<64x128xbf16>
    %25 = vector.shape_cast %22 : vector<64x128xbf16> to vector<1x1x64x128xbf16>
    tpu.vector_store %arg5[%c0_21, %c0_22, %c0_23, %c0_24], %25 {strides = array<i32>} : memref<1x1x64x128xbf16, #tpu.memory_space<vmem>>, vector<1x1x64x128xbf16>,
    return
  }
  func.func @transform_0(%arg0: i32, %arg1: i32) -> (i32, i32, i32, i32) {
    %c0_i32 = arith.constant 0 : i32
    %c0_i32_0 = arith.constant 0 : i32
    %c0_i32_1 = arith.constant 0 : i32
    return %arg0, %arg1, %c0_i32, %c0_i32_0 : i32, i32, i32, i32
  }
  func.func @transform_1(%arg0: i32, %arg1: i32) -> (i32, i32, i32) {
    %c0_i32 = arith.constant 0 : i32
    %c0_i32_0 = arith.constant 0 : i32
    %c0_i32_1 = arith.constant 0 : i32
    %c0_i32_2 = arith.constant 0 : i32
    return %c0_i32, %c0_i32_0, %c0_i32_1 : i32, i32, i32
  }
  func.func @transform_2(%arg0: i32, %arg1: i32) -> (i32, i32) {
    %c0_i32 = arith.constant 0 : i32
    %c0_i32_0 = arith.constant 0 : i32
    %c0_i32_1 = arith.constant 0 : i32
    return %c0_i32, %c0_i32_0 : i32, i32
  }
  func.func @transform_3(%arg0: i32, %arg1: i32) -> (i32, i32, i32, i32) {
    %c0_i32 = arith.constant 0 : i32
    %c0_i32_0 = arith.constant 0 : i32
    %c0_i32_1 = arith.constant 0 : i32
    return %arg0, %arg1, %c0_i32, %c0_i32_0 : i32, i32, i32, i32
  }
}

module attributes {stable_mosaic.version = 11 : i64} {
  func.func @_outlayer_skip_kernel(%arg0: i32, %arg1: memref<128x128xbf16, #tpu.memory_space<vmem>>, %arg2: memref<128x128xbf16, #tpu.memory_space<vmem>>, %arg3: memref<128x128xbf16, #tpu.memory_space<vmem>>, %arg4: memref<128x128xbf16, #tpu.memory_space<vmem>>, %arg5: memref<128x8xbf16, #tpu.memory_space<vmem>>, %arg6: memref<128x128xbf16, #tpu.memory_space<vmem>>, %arg7: memref<128x128xbf16, #tpu.memory_space<vmem>>, %arg8: memref<128x128xbf16, #tpu.memory_space<vmem>>, %arg9: memref<128x128xbf16, #tpu.memory_space<vmem>>, %arg10: memref<8x128xbf16, #tpu.memory_space<vmem>>, %arg11: memref<1x128xf32, #tpu.memory_space<vmem>>, %arg12: memref<1x128xf32, #tpu.memory_space<vmem>>, %arg13: memref<128x128xf32, #tpu.memory_space<vmem>>) attributes {dimension_semantics = [#tpu.dimension_semantics<parallel>], iteration_bounds = array<i64: 1>, scalar_prefetch = 0 : i64, scratch_operands = 0 : i64, tpu.core_type = #tpu.core_type<tc>, window_params = [{transform_indices = @transform_0, window_bounds = array<i64: 128, 128>}, {transform_indices = @transform_1, window_bounds = array<i64: 128, 128>}, {transform_indices = @transform_2, window_bounds = array<i64: 128, 128>}, {transform_indices = @transform_3, window_bounds = array<i64: 128, 128>}, {transform_indices = @transform_4, window_bounds = array<i64: 128, 8>}, {pipeline_mode = #tpu.pipeline_mode<synchronous>, transform_indices = @transform_5, window_bounds = array<i64: 128, 128>}, {pipeline_mode = #tpu.pipeline_mode<synchronous>, transform_indices = @transform_6, window_bounds = array<i64: 128, 128>}, {pipeline_mode = #tpu.pipeline_mode<synchronous>, transform_indices = @transform_7, window_bounds = array<i64: 128, 128>}, {pipeline_mode = #tpu.pipeline_mode<synchronous>, transform_indices = @transform_8, window_bounds = array<i64: 128, 128>}, {pipeline_mode = #tpu.pipeline_mode<synchronous>, transform_indices = @transform_9, window_bounds = array<i64: 8, 128>}, {pipeline_mode = #tpu.pipeline_mode<synchronous>, transform_indices = @transform_10, window_bounds = array<i64: 1, 128>}, {pipeline_mode = #tpu.pipeline_mode<synchronous>, transform_indices = @transform_11, window_bounds = array<i64: 1, 128>}, {transform_indices = @transform_12, window_bounds = array<i64: 128, 128>}]} {
    %c0 = arith.constant 0 : index
    %c0_0 = arith.constant 0 : index
    %0 = vector.load %arg1[%c0, %c0_0] : memref<128x128xbf16, #tpu.memory_space<vmem>>, vector<128x128xbf16>
    %c0_1 = arith.constant 0 : index
    %c0_2 = arith.constant 0 : index
    %1 = vector.load %arg6[%c0_1, %c0_2] : memref<128x128xbf16, #tpu.memory_space<vmem>>, vector<128x128xbf16>
    %cst = arith.constant dense<0.000000e+00> : vector<128x128xf32>
    %2 = tpu.matmul %0, %1, %cst {dimension_numbers = #tpu.dot_dimension_numbers<[1], [0], [0], [1], [0, 0, 1, 1], [], []>} : vector<128x128xbf16>, vector<128x128xbf16>, vector<128x128xf32> -> vector<128x128xf32>
    %c0_3 = arith.constant 0 : index
    %c0_4 = arith.constant 0 : index
    %3 = vector.load %arg2[%c0_3, %c0_4] : memref<128x128xbf16, #tpu.memory_space<vmem>>, vector<128x128xbf16>
    %c0_5 = arith.constant 0 : index
    %c0_6 = arith.constant 0 : index
    %4 = vector.load %arg7[%c0_5, %c0_6] : memref<128x128xbf16, #tpu.memory_space<vmem>>, vector<128x128xbf16>
    %cst_7 = arith.constant dense<0.000000e+00> : vector<128x128xf32>
    %5 = tpu.matmul %3, %4, %cst_7 {dimension_numbers = #tpu.dot_dimension_numbers<[1], [0], [0], [1], [0, 0, 1, 1], [], []>} : vector<128x128xbf16>, vector<128x128xbf16>, vector<128x128xf32> -> vector<128x128xf32>
    %6 = arith.addf %2, %5 : vector<128x128xf32>
    %c0_8 = arith.constant 0 : index
    %c0_9 = arith.constant 0 : index
    %7 = vector.load %arg3[%c0_8, %c0_9] : memref<128x128xbf16, #tpu.memory_space<vmem>>, vector<128x128xbf16>
    %c0_10 = arith.constant 0 : index
    %c0_11 = arith.constant 0 : index
    %8 = vector.load %arg8[%c0_10, %c0_11] : memref<128x128xbf16, #tpu.memory_space<vmem>>, vector<128x128xbf16>
    %cst_12 = arith.constant dense<0.000000e+00> : vector<128x128xf32>
    %9 = tpu.matmul %7, %8, %cst_12 {dimension_numbers = #tpu.dot_dimension_numbers<[1], [0], [0], [1], [0, 0, 1, 1], [], []>} : vector<128x128xbf16>, vector<128x128xbf16>, vector<128x128xf32> -> vector<128x128xf32>
    %10 = arith.addf %6, %9 : vector<128x128xf32>
    %c0_13 = arith.constant 0 : index
    %c0_14 = arith.constant 0 : index
    %11 = vector.load %arg4[%c0_13, %c0_14] : memref<128x128xbf16, #tpu.memory_space<vmem>>, vector<128x128xbf16>
    %c0_15 = arith.constant 0 : index
    %c0_16 = arith.constant 0 : index
    %12 = vector.load %arg9[%c0_15, %c0_16] : memref<128x128xbf16, #tpu.memory_space<vmem>>, vector<128x128xbf16>
    %cst_17 = arith.constant dense<0.000000e+00> : vector<128x128xf32>
    %13 = tpu.matmul %11, %12, %cst_17 {dimension_numbers = #tpu.dot_dimension_numbers<[1], [0], [0], [1], [0, 0, 1, 1], [], []>} : vector<128x128xbf16>, vector<128x128xbf16>, vector<128x128xf32> -> vector<128x128xf32>
    %14 = arith.addf %10, %13 : vector<128x128xf32>
    %c0_18 = arith.constant 0 : index
    %c0_19 = arith.constant 0 : index
    %15 = vector.load %arg11[%c0_18, %c0_19] : memref<1x128xf32, #tpu.memory_space<vmem>>, vector<1x128xf32>
    %16 = vector.broadcast %15 : vector<1x128xf32> to vector<128x128xf32>
    %17 = arith.addf %14, %16 : vector<128x128xf32>
    %cst_20 = arith.constant 0.000000e+00 : f32
    %18 = vector.broadcast %cst_20 : f32 to vector<128x128xf32>
    %19 = arith.maximumf %17, %18 : vector<128x128xf32>
    %c0_21 = arith.constant 0 : index
    %c0_22 = arith.constant 0 : index
    %20 = vector.load %arg5[%c0_21, %c0_22] : memref<128x8xbf16, #tpu.memory_space<vmem>>, vector<128x8xbf16>
    %c0_23 = arith.constant 0 : index
    %c0_24 = arith.constant 0 : index
    %21 = vector.load %arg10[%c0_23, %c0_24] : memref<8x128xbf16, #tpu.memory_space<vmem>>, vector<8x128xbf16>
    %cst_25 = arith.constant dense<0.000000e+00> : vector<128x128xf32>
    %22 = tpu.matmul %20, %21, %cst_25 {dimension_numbers = #tpu.dot_dimension_numbers<[1], [0], [0], [1], [0, 0, 1, 1], [], []>} : vector<128x8xbf16>, vector<8x128xbf16>, vector<128x128xf32> -> vector<128x128xf32>
    %23 = arith.addf %19, %22 : vector<128x128xf32>
    %c0_26 = arith.constant 0 : index
    %c0_27 = arith.constant 0 : index
    %24 = vector.load %arg12[%c0_26, %c0_27] : memref<1x128xf32, #tpu.memory_space<vmem>>, vector<1x128xf32>
    %25 = vector.broadcast %24 : vector<1x128xf32> to vector<128x128xf32>
    %26 = arith.addf %23, %25 : vector<128x128xf32>
    %c0_28 = arith.constant 0 : index
    %c0_29 = arith.constant 0 : index
    %27 = vector.load %arg13[%c0_28, %c0_29] : memref<128x128xf32, #tpu.memory_space<vmem>>, vector<128x128xf32>
    tpu.vector_store %arg13[%c0_28, %c0_29], %26 {strides = array<i32>} : memref<128x128xf32, #tpu.memory_space<vmem>>, vector<128x128xf32>,
    return
  }
  func.func @transform_0(%arg0: i32) -> (i32, i32) {
    %c0_i32 = arith.constant 0 : i32
    %c0_i32_0 = arith.constant 0 : i32
    return %arg0, %c0_i32 : i32, i32
  }
  func.func @transform_1(%arg0: i32) -> (i32, i32) {
    %c0_i32 = arith.constant 0 : i32
    %c0_i32_0 = arith.constant 0 : i32
    return %arg0, %c0_i32 : i32, i32
  }
  func.func @transform_2(%arg0: i32) -> (i32, i32) {
    %c0_i32 = arith.constant 0 : i32
    %c0_i32_0 = arith.constant 0 : i32
    return %arg0, %c0_i32 : i32, i32
  }
  func.func @transform_3(%arg0: i32) -> (i32, i32) {
    %c0_i32 = arith.constant 0 : i32
    %c0_i32_0 = arith.constant 0 : i32
    return %arg0, %c0_i32 : i32, i32
  }
  func.func @transform_4(%arg0: i32) -> (i32, i32) {
    %c0_i32 = arith.constant 0 : i32
    %c0_i32_0 = arith.constant 0 : i32
    return %arg0, %c0_i32 : i32, i32
  }
  func.func @transform_5(%arg0: i32) -> (i32, i32) {
    %c0_i32 = arith.constant 0 : i32
    %c0_i32_0 = arith.constant 0 : i32
    %c0_i32_1 = arith.constant 0 : i32
    return %c0_i32, %c0_i32_0 : i32, i32
  }
  func.func @transform_6(%arg0: i32) -> (i32, i32) {
    %c0_i32 = arith.constant 0 : i32
    %c0_i32_0 = arith.constant 0 : i32
    %c0_i32_1 = arith.constant 0 : i32
    return %c0_i32, %c0_i32_0 : i32, i32
  }
  func.func @transform_7(%arg0: i32) -> (i32, i32) {
    %c0_i32 = arith.constant 0 : i32
    %c0_i32_0 = arith.constant 0 : i32
    %c0_i32_1 = arith.constant 0 : i32
    return %c0_i32, %c0_i32_0 : i32, i32
  }
  func.func @transform_8(%arg0: i32) -> (i32, i32) {
    %c0_i32 = arith.constant 0 : i32
    %c0_i32_0 = arith.constant 0 : i32
    %c0_i32_1 = arith.constant 0 : i32
    return %c0_i32, %c0_i32_0 : i32, i32
  }
  func.func @transform_9(%arg0: i32) -> (i32, i32) {
    %c0_i32 = arith.constant 0 : i32
    %c0_i32_0 = arith.constant 0 : i32
    %c0_i32_1 = arith.constant 0 : i32
    return %c0_i32, %c0_i32_0 : i32, i32
  }
  func.func @transform_10(%arg0: i32) -> (i32, i32) {
    %c0_i32 = arith.constant 0 : i32
    %c0_i32_0 = arith.constant 0 : i32
    %c0_i32_1 = arith.constant 0 : i32
    return %c0_i32, %c0_i32_0 : i32, i32
  }
  func.func @transform_11(%arg0: i32) -> (i32, i32) {
    %c0_i32 = arith.constant 0 : i32
    %c0_i32_0 = arith.constant 0 : i32
    %c0_i32_1 = arith.constant 0 : i32
    return %c0_i32, %c0_i32_0 : i32, i32
  }
  func.func @transform_12(%arg0: i32) -> (i32, i32) {
    %c0_i32 = arith.constant 0 : i32
    %c0_i32_0 = arith.constant 0 : i32
    return %arg0, %c0_i32 : i32, i32
  }
}

</mosaic_0001>

<bundles_post_ra>
// kernel: inception_pva_v2_forward.4
= control target key start
LH: loop header
LB: loop body
LE: loop exit
PB: predicated region body
PF: predicated region fallthrough
CT: control target
= control target key end

     0   :  { %vm112_vm0 = vcmask 1043456   ;;  %vm87_vm1 = vcmask 64512   ;;  %s800_s2 = inlined_call_operand.vmem [shape: bf16[8,128], index: 2, kind: input, shape index: {}]   ;;  %s801_s3 = inlined_call_operand.vmem [shape: bf16[8,128], index: 3, kind: input, shape index: {}]   ;;  %s802_s0 = inlined_call_operand.vmem [shape: bf16[128,8], index: 0, kind: input, shape index: {}]   ;;  %s803_s1 = inlined_call_operand.vmem [shape: bf16[128,8], index: 1, kind: input, shape index: {}]   ;;  %s804_s4 = inlined_call_operand.vmem [shape: f32[1,128], index: 4, kind: input, shape index: {}]   ;;  %s805_s5 = inlined_call_operand.vmem [shape: f32[1,128], index: 5, kind: input, shape index: {}]   ;;  %s806_s6 = inlined_call_operand.vmem [shape: bf16[128,128], index: 6, kind: output, shape index: {0}]   ;;  %s807_s7 = inlined_call_operand.vmem [shape: bf16[128,128], index: 7, kind: output, shape index: {1}]  }
   0x1   :  { %v42_v0 = vld [vmem:[%s800_s2] sm:$0xf]  ;;  %v487_v8 = vld [vmem:[%s802_s0 + $0x8] sm:$0xff]  ;;  %v488_v12 = vld [vmem:[%s802_s0 + $0x10] sm:$0xff] }
   0x2   :  { %v229_v1 = vld [vmem:[%s801_s3] sm:$0xf]  ;;  %v114_v2 = vsel %vm112_vm0, %v42_v0, 0  ;;  %v491_v9 = vld [vmem:[%s802_s0 + $0x28] sm:$0xff]  ;;  %v492_v13 = vld [vmem:[%s802_s0 + $0x30] sm:$0xff] }
   0x3   :  { %v299_v3 = vsel %vm112_vm0, %v229_v1, 0  ;;  %v486_v4 = vld [vmem:[%s802_s0] sm:$0xff]  ;;  %123 = vmatpush.bf16.msra.mxu0 %v114_v2  ;;  %596 = vmatpush.bf16.msra.mxu2 %v114_v2  ;;  %v495_v10 = vld [vmem:[%s803_s1 + $0x8] sm:$0xff]  ;;  %v496_v14 = vld [vmem:[%s803_s1 + $0x10] sm:$0xff] }
   0x4   :  { %v490_v5 = vld [vmem:[%s802_s0 + $0x20] sm:$0xff]  ;;  %308 = vmatpush.bf16.msra.mxu1 %v299_v3  ;;  %597 = vmatpush.bf16.msra.mxu3 %v299_v3  ;;  %v499_v11 = vld [vmem:[%s803_s1 + $0x28] sm:$0xff]  ;;  %v500_v15 = vld [vmem:[%s803_s1 + $0x30] sm:$0xff] }
   0x5   :  { %v494_v6 = vld [vmem:[%s803_s1] sm:$0xff]  ;;  %v489_v16 = vld [vmem:[%s802_s0 + $0x18] sm:$0xff] }
   0x6   :  { %v498_v7 = vld [vmem:[%s803_s1 + $0x20] sm:$0xff]  ;;  %438 = vmatmul.msk.bf16.vlgmr.msra.gmra.mxu0 %vm87_vm1, %v486_v4  ;;  %442 = vmatmul.msk.bf16.vlgmr.msra.gmra.mxu2 %vm87_vm1, %v490_v5  ;;  %v493_v17 = vld [vmem:[%s802_s0 + $0x38] sm:$0xff] }
   0x7   :  { %478 = vmatmul.msk.bf16.vlgmr.msra.gmra.mxu1 %vm87_vm1, %v494_v6  ;;  %482 = vmatmul.msk.bf16.vlgmr.msra.gmra.mxu3 %vm87_vm1, %v498_v7  ;;  %v497_v18 = vld [vmem:[%s803_s1 + $0x18] sm:$0xff]  ;;  %v713_v22 = vld [vmem:[%s804_s4] ss:$0 sm:$0xff] }
   0x8   :  { %v501_v19 = vld [vmem:[%s803_s1 + $0x38] sm:$0xff]  ;;  %v718_v23 = vld [vmem:[%s805_s5] ss:$0 sm:$0xff] }
  0x16   :  { %439 = vmatmul.msk.bf16.gmra.mxu0 %vm87_vm1, %v487_v8  ;;  %443 = vmatmul.msk.bf16.gmra.mxu2 %vm87_vm1, %v491_v9 }
  0x17   :  { %479 = vmatmul.msk.bf16.gmra.mxu1 %vm87_vm1, %v495_v10  ;;  %483 = vmatmul.msk.bf16.gmra.mxu3 %vm87_vm1, %v499_v11 }
  0x26   :  { %440 = vmatmul.msk.bf16.gmra.mxu0 %vm87_vm1, %v488_v12  ;;  %444 = vmatmul.msk.bf16.gmra.mxu2 %vm87_vm1, %v492_v13 }
  0x27   :  { %480 = vmatmul.msk.bf16.gmra.mxu1 %vm87_vm1, %v496_v14  ;;  %484 = vmatmul.msk.bf16.gmra.mxu3 %vm87_vm1, %v500_v15 }
  0x36   :  { %441 = vmatmul.msk.bf16.gmra.mxu0 %vm87_vm1, %v489_v16  ;;  %445 = vmatmul.msk.bf16.gmra.mxu2 %vm87_vm1, %v493_v17 }
  0x37   :  { %481 = vmatmul.msk.bf16.gmra.mxu1 %vm87_vm1, %v497_v18  ;;  %485 = vmatmul.msk.bf16.gmra.mxu3 %vm87_vm1, %v501_v19 }
  0x83   :  { %v125_v20 = vpop.f32.mrf.mxu0 }
  0x84   :  { %v310_v21 = vpop.f32.mrf.mxu1  ;;  %v126_v25 = vadd.f32 %v713_v22, %v125_v20 }
  0x85   :  { %v311_v27 = vadd.f32 %v718_v23, %v310_v21 }
  0x86   :  { %v165_v32 = vmax.f32 %v126_v25, 0.0 }
  0x87   :  { %v350_v34 = vmax.f32 %v311_v27, 0.0 }
  0x89   :  { %v145_v24 = vpop.f32.mrf.mxu2 }
  0x8a   :  { %v330_v26 = vpop.f32.mrf.mxu3  ;;  %v146_v36 = vadd.f32 %v713_v22, %v145_v24 }
  0x8b   :  { %v127_v28 = vpop.f32.mrf.mxu0  ;;  %v331_v38 = vadd.f32 %v718_v23, %v330_v26 }
  0x8c   :  { %v128_v29 = vadd.f32 %v713_v22, %v127_v28  ;;  %v312_v30 = vpop.f32.mrf.mxu1  ;;  %v173_v45 = vmax.f32 %v146_v36, 0.0 }
  0x8d   :  { %v313_v31 = vadd.f32 %v718_v23, %v312_v30  ;;  %v358_v48 = vmax.f32 %v331_v38, 0.0 }
  0x8e   :  { %v166_v33 = vmax.f32 %v128_v29, 0.0 }
  0x8f   :  { %v351_v35 = vmax.f32 %v313_v31, 0.0 }
  0x90   :  { %v505_v37 = vpack.c.bf16 %v166_v33, %v165_v32 }
  0x91   :  { %v545_v39 = vpack.c.bf16 %v351_v35, %v350_v34  ;;  %v147_v40 = vpop.f32.mrf.mxu2 }
  0x92   :  { %506 = vst [vmem:[%s806_s6] sm:$0xff] %v505_v37   ;;  %v148_v41 = vadd.f32 %v713_v22, %v147_v40  ;;  %v332_v42 = vpop.f32.mrf.mxu3 }
  0x93   :  { %546 = vst [vmem:[%s807_s7] sm:$0xff] %v545_v39   ;;  %v333_v43 = vadd.f32 %v718_v23, %v332_v42  ;;  %v130_v44 = vpop.f32.mrf.mxu0 }
  0x94   :  { %v174_v46 = vmax.f32 %v148_v41, 0.0  ;;  %v315_v47 = vpop.f32.mrf.mxu1  ;;  %v131_v53 = vadd.f32 %v713_v22, %v130_v44 }
  0x95   :  { %v359_v49 = vmax.f32 %v333_v43, 0.0  ;;  %v316_v55 = vadd.f32 %v718_v23, %v315_v47 }
  0x96   :  { %v525_v50 = vpack.c.bf16 %v174_v46, %v173_v45  ;;  %v167_v60 = vmax.f32 %v131_v53, 0.0 }
  0x97   :  { %v565_v51 = vpack.c.bf16 %v359_v49, %v358_v48  ;;  %v352_v62 = vmax.f32 %v316_v55, 0.0 }
  0x98   :  { %585 = vst [vmem:[%s806_s6 + $0x20] sm:$0xff] %v525_v50  }
  0x99   :  { %592 = vst [vmem:[%s807_s7 + $0x20] sm:$0xff] %v565_v51   ;;  %v150_v52 = vpop.f32.mrf.mxu2 }
  0x9a   :  { %v335_v54 = vpop.f32.mrf.mxu3  ;;  %v151_v0 = vadd.f32 %v713_v22, %v150_v52 }
  0x9b   :  { %v132_v56 = vpop.f32.mrf.mxu0  ;;  %v336_v2 = vadd.f32 %v718_v23, %v335_v54 }
  0x9c   :  { %v133_v57 = vadd.f32 %v713_v22, %v132_v56  ;;  %v317_v58 = vpop.f32.mrf.mxu1  ;;  %v175_v9 = vmax.f32 %v151_v0, 0.0 }
  0x9d   :  { %v318_v59 = vadd.f32 %v718_v23, %v317_v58  ;;  %v360_v12 = vmax.f32 %v336_v2, 0.0 }
  0x9e   :  { %v168_v61 = vmax.f32 %v133_v57, 0.0 }
  0x9f   :  { %v353_v63 = vmax.f32 %v318_v59, 0.0 }
  0xa0   :  { %v510_v1 = vpack.c.bf16 %v168_v61, %v167_v60 }
  0xa1   :  { %v550_v3 = vpack.c.bf16 %v353_v63, %v352_v62  ;;  %v152_v4 = vpop.f32.mrf.mxu2 }
  0xa2   :  { %582 = vst [vmem:[%s806_s6 + $0x8] sm:$0xff] %v510_v1   ;;  %v153_v5 = vadd.f32 %v713_v22, %v152_v4  ;;  %v337_v6 = vpop.f32.mrf.mxu3 }
  0xa3   :  { %589 = vst [vmem:[%s807_s7 + $0x8] sm:$0xff] %v550_v3   ;;  %v338_v7 = vadd.f32 %v718_v23, %v337_v6  ;;  %v135_v8 = vpop.f32.mrf.mxu0 }
  0xa4   :  { %v176_v10 = vmax.f32 %v153_v5, 0.0  ;;  %v320_v11 = vpop.f32.mrf.mxu1  ;;  %v136_v17 = vadd.f32 %v713_v22, %v135_v8 }
  0xa5   :  { %v361_v13 = vmax.f32 %v338_v7, 0.0  ;;  %v321_v19 = vadd.f32 %v718_v23, %v320_v11 }
  0xa6   :  { %v530_v14 = vpack.c.bf16 %v176_v10, %v175_v9  ;;  %v169_v26 = vmax.f32 %v136_v17, 0.0 }
  0xa7   :  { %v570_v15 = vpack.c.bf16 %v361_v13, %v360_v12  ;;  %v354_v28 = vmax.f32 %v321_v19, 0.0 }
  0xa8   :  { %586 = vst [vmem:[%s806_s6 + $0x28] sm:$0xff] %v530_v14  }
  0xa9   :  { %593 = vst [vmem:[%s807_s7 + $0x28] sm:$0xff] %v570_v15   ;;  %v155_v16 = vpop.f32.mrf.mxu2 }
  0xaa   :  { %v340_v18 = vpop.f32.mrf.mxu3  ;;  %v156_v30 = vadd.f32 %v713_v22, %v155_v16 }
  0xab   :  { %v137_v20 = vpop.f32.mrf.mxu0  ;;  %v341_v32 = vadd.f32 %v718_v23, %v340_v18 }
  0xac   :  { %v138_v21 = vadd.f32 %v713_v22, %v137_v20  ;;  %v322_v24 = vpop.f32.mrf.mxu1  ;;  %v177_v39 = vmax.f32 %v156_v30, 0.0 }
  0xad   :  { %v323_v25 = vadd.f32 %v718_v23, %v322_v24  ;;  %v362_v42 = vmax.f32 %v341_v32, 0.0 }
  0xae   :  { %v170_v27 = vmax.f32 %v138_v21, 0.0 }
  0xaf   :  { %v355_v29 = vmax.f32 %v323_v25, 0.0 }
  0xb0   :  { %v515_v31 = vpack.c.bf16 %v170_v27, %v169_v26 }
  0xb1   :  { %v555_v33 = vpack.c.bf16 %v355_v29, %v354_v28  ;;  %v157_v34 = vpop.f32.mrf.mxu2 }
  0xb2   :  { %583 = vst [vmem:[%s806_s6 + $0x10] sm:$0xff] %v515_v31   ;;  %v158_v35 = vadd.f32 %v713_v22, %v157_v34  ;;  %v342_v36 = vpop.f32.mrf.mxu3 }
  0xb3   :  { %590 = vst [vmem:[%s807_s7 + $0x10] sm:$0xff] %v555_v33   ;;  %v343_v37 = vadd.f32 %v718_v23, %v342_v36  ;;  %v140_v38 = vpop.f32.mrf.mxu0 }
  0xb4   :  { %v178_v40 = vmax.f32 %v158_v35, 0.0  ;;  %v325_v41 = vpop.f32.mrf.mxu1  ;;  %v141_v47 = vadd.f32 %v713_v22, %v140_v38 }
  0xb5   :  { %v363_v43 = vmax.f32 %v343_v37, 0.0  ;;  %v326_v49 = vadd.f32 %v718_v23, %v325_v41 }
  0xb6   :  { %v535_v44 = vpack.c.bf16 %v178_v40, %v177_v39  ;;  %v171_v54 = vmax.f32 %v141_v47, 0.0 }
  0xb7   :  { %v575_v45 = vpack.c.bf16 %v363_v43, %v362_v42  ;;  %v356_v56 = vmax.f32 %v326_v49, 0.0 }
  0xb8   :  { %587 = vst [vmem:[%s806_s6 + $0x30] sm:$0xff] %v535_v44  }
  0xb9   :  { %594 = vst [vmem:[%s807_s7 + $0x30] sm:$0xff] %v575_v45   ;;  %v160_v46 = vpop.f32.mrf.mxu2 }
  0xba   :  { %v345_v48 = vpop.f32.mrf.mxu3  ;;  %v161_v58 = vadd.f32 %v713_v22, %v160_v46 }
  0xbb   :  { %v142_v50 = vpop.f32.mrf.mxu0  ;;  %v346_v60 = vadd.f32 %v718_v23, %v345_v48 }
  0xbc   :  { %v143_v51 = vadd.f32 %v713_v22, %v142_v50  ;;  %v327_v52 = vpop.f32.mrf.mxu1  ;;  %v179_v2 = vmax.f32 %v161_v58, 0.0 }
  0xbd   :  { %v328_v53 = vadd.f32 %v718_v23, %v327_v52  ;;  %v364_v4 = vmax.f32 %v346_v60, 0.0 }
  0xbe   :  { %v172_v55 = vmax.f32 %v143_v51, 0.0 }
  0xbf   :  { %v357_v57 = vmax.f32 %v328_v53, 0.0 }
  0xc0   :  { %v520_v59 = vpack.c.bf16 %v172_v55, %v171_v54 }
  0xc1   :  { %v560_v61 = vpack.c.bf16 %v357_v57, %v356_v56  ;;  %v162_v62 = vpop.f32.mrf.mxu2 }
  0xc2   :  { %584 = vst [vmem:[%s806_s6 + $0x18] sm:$0xff] %v520_v59   ;;  %v163_v63 = vadd.f32 %v713_v22, %v162_v62  ;;  %v347_v0 = vpop.f32.mrf.mxu3 }
  0xc3   :  { %591 = vst [vmem:[%s807_s7 + $0x18] sm:$0xff] %v560_v61   ;;  %v348_v1 = vadd.f32 %v718_v23, %v347_v0 }
  0xc4   :  { %v180_v3 = vmax.f32 %v163_v63, 0.0 }
  0xc5   :  { %v365_v5 = vmax.f32 %v348_v1, 0.0 }
  0xc6   :  { %v540_v6 = vpack.c.bf16 %v180_v3, %v179_v2 }
  0xc7   :  { %v580_v7 = vpack.c.bf16 %v365_v5, %v364_v4 }
  0xc8   :  { %588 = vst [vmem:[%s806_s6 + $0x38] sm:$0xff] %v540_v6  }
  0xc9   :  { %595 = vst [vmem:[%s807_s7 + $0x38] sm:$0xff] %v580_v7  }

// kernel: inception_pva_v2_forward.5
= control target key start
LH: loop header
LB: loop body
LE: loop exit
PB: predicated region body
PF: predicated region fallthrough
CT: control target
= control target key end

     0   :  { %s854_s12 = smov 0   ;;  %s856_s13 = smov 0   ;;  %s953_s0 = inlined_call_operand.vmem [shape: bf16[2,1,80,48], index: 0, kind: input, shape index: {}]   ;;  %s954_s1 = inlined_call_operand.vmem [shape: bf16[3,48,128], index: 1, kind: input, shape index: {}]   ;;  %s955_s2 = inlined_call_operand.vmem [shape: f32[1,128], index: 2, kind: input, shape index: {}]   ;;  %s956_s3 = inlined_call_operand.vmem [shape: bf16[2,1,64,128], index: 3, kind: output, shape index: {}]  }
   0x1   :  { %s858_s14 = smov 0  }
   0x2 LB: > { %s25_s15 = sadd.s32 1, %s828_s13  ;;  %p609_p0 = scmp.ge.s32.totalorder %s832_s14, 1  ;;  %s832_s14 = sphi %s858_s14, %s13_s14   ;;  %s828_s13 = sphi %s856_s13, %s958_s13   ;;  %s824_s12 = sphi %s854_s12, %s957_s12  }
   0x3   : > { %p27_p1 = scmp.ge.s32.totalorder %s25_s15, 2  ;;  %p157_p2 = scmp.lt.s32.totalorder %s832_s14, 3 }
   0x5   : > { %s960_s15 = smov (%p27_p1, %s25_s15), 0  ;;  %p158_p3 = pnand %p609_p0, %p157_p2 }
   0x6   : > { %p189_p4 = scmp.lt.s32.totalorder (!%p158_p3), %s824_s12, 1 }
   0x7   : > { %161 = sbr.rel (%p158_p3) target bundleno = 207 (0xcf), region = 32 }
   0xc   : > { %v697_v0 = vld [vmem:[%s954_s1 + $0x28] sm:$0xff]  ;;  %v694_v1 = vld [vmem:[%s954_s1 + $0x10] sm:$0xff]  ;;  %v704_v2 = vld [vmem:[%s954_s1 + $0x40] sm:$0xff]  ;;  %s962_s12 = smov (!%p189_p4, %s824_s12), 1  ;;  %vm268_vm0 = vcmask 392192  }
   0xd   : > { %286 = vmatpush.bf16.msra.mxu0 %v697_v0  ;;  %767 = vmatpush.bf16.msra.mxu3 %v697_v0  ;;  %v696_v3 = vld [vmem:[%s954_s1 + $0x20] sm:$0xff]  ;;  %v693_v4 = vld [vmem:[%s954_s1 + $0x8] sm:$0xff]  ;;  %v703_v5 = vld [vmem:[%s954_s1 + $0x38] sm:$0xff]  ;;  %s784_s28 = smul.u32 40, %s962_s12  ;;  %s691_s17 = sshll.u32 %s962_s12, 5 }
   0xe   : > { %770 = vmatpush.bf16.msra.mxu1 %v694_v1  ;;  %773 = vmatpush.bf16.msra.mxu2 %v704_v2  ;;  %v695_v6 = vld [vmem:[%s954_s1 + $0x18] sm:$0xff]  ;;  %v692_v7 = vld [vmem:[%s954_s1] sm:$0xff]  ;;  %v702_v8 = vld [vmem:[%s954_s1 + $0x30] sm:$0xff]  ;;  %s938_s20 = scalar_lea.vmem %s956_s3, %s691_s17 }
   0xf   : > { %s899_s6 = scalar_lea.vmem %s953_s0, %s784_s28  ;;  %v809_v29 = vld [vmem:[%s955_s2] ss:$0 sm:$0xff] }
  0x10   : > { %v778_v9 = vld [vmem:[%s899_s6 + $0x4] sm:$0xff]   ;;  %v780_v10 = vld [vmem:[%s899_s6 + $0xc] sm:$0xff]   ;;  %v782_v13 = vld [vmem:[%s899_s6 + $0x14] sm:$0xff]  }
  0x11   : > { %287 = vmatpush.bf16.msra.mxu0 %v696_v3  ;;  %768 = vmatpush.bf16.msra.mxu3 %v696_v3  ;;  %v699_v11 = vld [vmem:[%s899_s6 + $0x10] sm:$0xff]  ;;  %v741_v12 = vld [vmem:[%s899_s6 + $0x8] sm:$0xff]   ;;  %v706_v14 = vld [vmem:[%s899_s6] sm:$0xff]  }
  0x12   : > { %771 = vmatpush.bf16.msra.mxu1 %v693_v4  ;;  %774 = vmatpush.bf16.msra.mxu2 %v703_v5  ;;  %v700_v15 = vld [vmem:[%s899_s6 + $0x18] sm:$0xff]  ;;  %v742_v16 = vld [vmem:[%s899_s6 + $0x10] sm:$0xff]   ;;  %v698_v18 = vld [vmem:[%s899_s6 + $0x8] sm:$0xff] }
  0x13   : > { %v783_v17 = vld [vmem:[%s899_s6 + $0x1c] sm:$0xff] }
  0x14   : > { %v701_v19 = vld [vmem:[%s899_s6 + $0x20] sm:$0xff]  ;;  %v743_v20 = vld [vmem:[%s899_s6 + $0x18] sm:$0xff]  }
  0x15   : > { %288 = vmatpush.bf16.msra.mxu0 %v695_v6  ;;  %769 = vmatpush.bf16.msra.mxu3 %v695_v6 }
  0x16   : > { %772 = vmatpush.bf16.msra.mxu1 %v692_v7  ;;  %775 = vmatpush.bf16.msra.mxu2 %v702_v8 }
  0x18   : > { %631 = vmatmul.msk.bf16.vlgmr.msra.gmra.mxu0 %vm268_vm0, %v778_v9  ;;  %632 = vmatmul.msk.bf16.vlgmr.msra.gmra.mxu3 %vm268_vm0, %v780_v10 }
  0x19   : > { %351 = vmatpush.bf16.msrb.mxu0 %v694_v1  ;;  %648 = vmatmul.msk.bf16.vlgmr.msra.gmra.mxu1 %vm268_vm0, %v741_v12 }
  0x1a   : > { %686 = vmatmul.msk.bf16.vlgmr.msra.gmra.mxu2 %vm268_vm0, %v699_v11 }
  0x1d   : > { %352 = vmatpush.bf16.msrb.mxu0 %v693_v4 }
  0x21   : > { %353 = vmatpush.bf16.msrb.mxu0 %v692_v7 }
  0x25   : > { %445 = vmatpush.bf16.msra.mxu0 %v704_v2 }
  0x28   : > { %633 = vmatmul.msk.bf16.gmra.mxu3 %vm268_vm0, %v782_v13  ;;  %647 = vmatmul.msk.bf16.vlgmr.msrb.gmra.mxu0 %vm268_vm0, %v706_v14 }
  0x29   : > { %446 = vmatpush.bf16.msra.mxu0 %v703_v5  ;;  %649 = vmatmul.msk.bf16.gmra.mxu1 %vm268_vm0, %v742_v16 }
  0x2a   : > { %687 = vmatmul.msk.bf16.gmra.mxu2 %vm268_vm0, %v700_v15 }
  0x2d   : > { %447 = vmatpush.bf16.msra.mxu0 %v702_v8 }
  0x38   : > { %634 = vmatmul.msk.bf16.gmra.mxu3 %vm268_vm0, %v783_v17  ;;  %685 = vmatmul.msk.bf16.vlgmr.msra.gmra.mxu0 %vm268_vm0, %v698_v18 }
  0x39   : > { %650 = vmatmul.msk.bf16.gmra.mxu1 %vm268_vm0, %v743_v20 }
  0x3a   : > { %688 = vmatmul.msk.bf16.gmra.mxu2 %vm268_vm0, %v701_v19 }
  0x95   : > { %v290_v21 = vpop.f32.mrf.mxu0 }
  0x96   : > { %v360_v22 = vpop.f32.mrf.mxu1 }
  0x9b   : > { %v295_v23 = vpop.f32.mrf.mxu3 }
  0x9c   : > { %v361_v26 = vadd.f32 %v360_v22, %v295_v23 }
  0x9d   : > { %v454_v24 = vpop.f32.mrf.mxu2  ;;  %v292_v25 = vpop.f32.mrf.mxu0 }
  0x9e   : > { %v362_v27 = vpop.f32.mrf.mxu1  ;;  %v471_v28 = vadd.f32 %v454_v24, %v361_v26 }
  0xa0   : > { %v483_v34 = vadd.f32 %v809_v29, %v471_v28 }
  0xa2   : > { %v491_v38 = vmax.f32 %v483_v34, 0.0 }
  0xa3   : > { %v297_v30 = vpop.f32.mrf.mxu3 }
  0xa4   : > { %v363_v31 = vadd.f32 %v362_v27, %v297_v30 }
  0xa5   : > { %v456_v32 = vpop.f32.mrf.mxu2  ;;  %v355_v33 = vpop.f32.mrf.mxu0 }
  0xa6   : > { %v472_v35 = vadd.f32 %v456_v32, %v363_v31  ;;  %v365_v36 = vpop.f32.mrf.mxu1  ;;  %v356_v53 = vadd.f32 %v355_v33, %v290_v21 }
  0xa8   : > { %v484_v37 = vadd.f32 %v809_v29, %v472_v35 }
  0xaa   : > { %v492_v39 = vmax.f32 %v484_v37, 0.0 }
  0xab   : > { %v300_v40 = vpop.f32.mrf.mxu3 }
  0xac   : > { %v729_v41 = vpack.c.bf16 %v492_v39, %v491_v38  ;;  %v366_v44 = vadd.f32 %v365_v36, %v300_v40 }
  0xad   : > { %v459_v42 = vpop.f32.mrf.mxu2  ;;  %v357_v43 = vpop.f32.mrf.mxu0 }
  0xae   : > { %744 = vst [vmem:[%s938_s20 + $0x8] sm:$0xff] %v729_v41   ;;  %v367_v45 = vpop.f32.mrf.mxu1  ;;  %v473_v46 = vadd.f32 %v459_v42, %v366_v44  ;;  %v358_v60 = vadd.f32 %v357_v43, %v292_v25 }
  0xb0   : > { %v485_v51 = vadd.f32 %v809_v29, %v473_v46 }
  0xb2   : > { %v493_v56 = vmax.f32 %v485_v51, 0.0 }
  0xb3   : > { %v302_v47 = vpop.f32.mrf.mxu3 }
  0xb4   : > { %v368_v48 = vadd.f32 %v367_v45, %v302_v47 }
  0xb5   : > { %v461_v49 = vpop.f32.mrf.mxu2  ;;  %v449_v50 = vpop.f32.mrf.mxu0 }
  0xb6   : > { %v474_v52 = vadd.f32 %v461_v49, %v368_v48  ;;  %v370_v55 = vpop.f32.mrf.mxu1  ;;  %v469_v58 = vadd.f32 %v449_v50, %v356_v53 }
  0xb8   : > { %v486_v54 = vadd.f32 %v809_v29, %v474_v52  ;;  %v481_v0 = vadd.f32 %v809_v29, %v469_v58 }
  0xba   : > { %v494_v57 = vmax.f32 %v486_v54, 0.0  ;;  %v489_v4 = vmax.f32 %v481_v0, 0.0 }
  0xbb   : > { %v305_v59 = vpop.f32.mrf.mxu3 }
  0xbc   : > { %v734_v61 = vpack.c.bf16 %v494_v57, %v493_v56  ;;  %v371_v1 = vadd.f32 %v370_v55, %v305_v59 }
  0xbd   : > { %v464_v62 = vpop.f32.mrf.mxu2  ;;  %v451_v63 = vpop.f32.mrf.mxu0 }
  0xbe   : > { %745 = vst [vmem:[%s938_s20 + $0x10] sm:$0xff] %v734_v61   ;;  %v470_v2 = vadd.f32 %v451_v63, %v358_v60  ;;  %v475_v5 = vadd.f32 %v464_v62, %v371_v1  ;;  %v372_v7 = vpop.f32.mrf.mxu1 }
  0xc0   : > { %v482_v3 = vadd.f32 %v809_v29, %v470_v2  ;;  %v487_v12 = vadd.f32 %v809_v29, %v475_v5 }
  0xc2   : > { %v490_v6 = vmax.f32 %v482_v3, 0.0  ;;  %v495_v15 = vmax.f32 %v487_v12, 0.0 }
  0xc3   : > { %v307_v8 = vpop.f32.mrf.mxu3 }
  0xc4   : > { %v724_v9 = vpack.c.bf16 %v490_v6, %v489_v4  ;;  %v373_v10 = vadd.f32 %v372_v7, %v307_v8 }
  0xc5   : > { %v466_v11 = vpop.f32.mrf.mxu2 }
  0xc6   : > { %725 = vst [vmem:[%s938_s20] sm:$0xff] %v724_v9   ;;  %v476_v13 = vadd.f32 %v466_v11, %v373_v10 }
  0xc8   : > { %v488_v14 = vadd.f32 %v809_v29, %v476_v13 }
  0xca   : > { %v496_v16 = vmax.f32 %v488_v14, 0.0 }
  0xcc   : > { %v739_v17 = vpack.c.bf16 %v496_v16, %v495_v15 }
  0xce   : > { %746 = vst [vmem:[%s938_s20 + $0x18] sm:$0xff] %v739_v17  }
  0xcf PF: > { %s13_s14 = sadd.s32 1, %s832_s14   ;;  %s957_s12 = smov %s828_s13 }
  0xd0   : > { %p10_p5 = scmp.ge.s32.totalorder %s13_s14, 4   ;;  %s958_s13 = smov %s960_s15 }
  0xd2   :  { %12 = sbr.rel (!%p10_p5) target bundleno = 2 (0x2), region = 64 }

// kernel: inception_pva_v2_forward.7
= control target key start
LH: loop header
LB: loop body
LE: loop exit
PB: predicated region body
PF: predicated region fallthrough
CT: control target
= control target key end

     0   :  { %s1823_s0 = inlined_call_operand.vmem [shape: bf16[128,128], index: 0, kind: input, shape index: {}]   ;;  %s1824_s1 = inlined_call_operand.vmem [shape: bf16[128,128], index: 1, kind: input, shape index: {}]   ;;  %s1825_s2 = inlined_call_operand.vmem [shape: bf16[128,128], index: 2, kind: input, shape index: {}]   ;;  %s1826_s3 = inlined_call_operand.vmem [shape: bf16[128,128], index: 3, kind: input, shape index: {}]   ;;  %s1827_s4 = inlined_call_operand.vmem [shape: bf16[128,8], index: 4, kind: input, shape index: {}]   ;;  %s1828_s5 = inlined_call_operand.vmem [shape: bf16[128,128], index: 5, kind: input, shape index: {}]   ;;  %s1829_s6 = inlined_call_operand.vmem [shape: bf16[128,128], index: 6, kind: input, shape index: {}]   ;;  %s1830_s7 = inlined_call_operand.vmem [shape: bf16[128,128], index: 7, kind: input, shape index: {}]   ;;  %s1831_s8 = inlined_call_operand.vmem [shape: bf16[128,128], index: 8, kind: input, shape index: {}]   ;;  %s1832_s9 = inlined_call_operand.vmem [shape: bf16[8,128], index: 9, kind: input, shape index: {}]   ;;  %s1833_s10 = inlined_call_operand.vmem [shape: f32[1,128], index: 10, kind: input, shape index: {}]   ;;  %s1834_s11 = inlined_call_operand.vmem [shape: f32[1,128], index: 11, kind: input, shape index: {}]   ;;  %s1835_s12 = inlined_call_operand.hbm [shape: f32[128,128], index: 12, kind: output, shape index: {}]  }
   0x1   :  { %v1351_v0 = vld [vmem:[%s1829_s6 + $0x38] sm:$0xff]  ;;  %v1350_v1 = vld [vmem:[%s1829_s6 + $0x30] sm:$0xff]  ;;  %v1349_v2 = vld [vmem:[%s1829_s6 + $0x28] sm:$0xff] }
   0x2   :  { %1392 = vmatpush.bf16.msra.mxu1 %v1351_v0  ;;  %1393 = vmatpush.bf16.msra.mxu2 %v1351_v0 }
   0x3   :  { %1394 = vmatpush.bf16.msra.mxu3 %v1351_v0  ;;  %203 = vmatpush.bf16.msra.mxu0 %v1351_v0 }
   0x6   :  { %1395 = vmatpush.bf16.msra.mxu1 %v1350_v1  ;;  %1396 = vmatpush.bf16.msra.mxu2 %v1350_v1 }
   0x7   :  { %1397 = vmatpush.bf16.msra.mxu3 %v1350_v1  ;;  %204 = vmatpush.bf16.msra.mxu0 %v1350_v1 }
   0x8   :  { %17 = vsyncpa [#allocation3], 0  ;;  %v1348_v3 = vld [vmem:[%s1829_s6 + $0x20] sm:$0xff]  ;;  %v1347_v4 = vld [vmem:[%s1829_s6 + $0x18] sm:$0xff]  ;;  %vm901_vm0 = vcmask 1043456   ;;  %vm876_vm1 = vcmask 64512  }
   0x9   :  { %v1346_v5 = vld [vmem:[%s1829_s6 + $0x10] sm:$0xff]  ;;  %v1345_v6 = vld [vmem:[%s1829_s6 + $0x8] sm:$0xff]  ;;  %v1344_v7 = vld [vmem:[%s1829_s6] sm:$0xff]  ;;  %s1012_s19 = sshll.u32 %s1835_s12, 4  ;;  %s1449_s20 = smov 8   ;;  %s1013_s19 = int_to_ptr.hbm [resolvable:$true] %s1012_s19 }
   0xa   :  { %1398 = vmatpush.bf16.msra.mxu1 %v1349_v2  ;;  %1399 = vmatpush.bf16.msra.mxu2 %v1349_v2  ;;  %v1367_v8 = vld [vmem:[%s1830_s7 + $0x38] sm:$0xff]  ;;  %v1338_v11 = vld [vmem:[%s1824_s1 + $0x10] sm:$0xff]  ;;  %v1340_v12 = vld [vmem:[%s1824_s1 + $0x20] sm:$0xff] }
   0xb   :  { %1400 = vmatpush.bf16.msra.mxu3 %v1349_v2  ;;  %205 = vmatpush.bf16.msra.mxu0 %v1349_v2  ;;  %v1335_v9 = vld [vmem:[%s1828_s5 + $0x38] sm:$0xff]  ;;  %v835_v13 = vld [vmem:[%s1832_s9] sm:$0xf]  ;;  %v1342_v14 = vld [vmem:[%s1824_s1 + $0x30] sm:$0xff] }
   0xc   :  { %v1383_v10 = vld [vmem:[%s1831_s8 + $0x38] sm:$0xff]  ;;  %v1366_v15 = vld [vmem:[%s1830_s7 + $0x30] sm:$0xff]  ;;  %v903_v18 = vsel %vm901_vm0, %v835_v13, 0  ;;  %v1336_v19 = vld [vmem:[%s1824_s1] sm:$0xff] }
   0xd   :  { %v1334_v16 = vld [vmem:[%s1828_s5 + $0x30] sm:$0xff]  ;;  %v1365_v20 = vld [vmem:[%s1830_s7 + $0x28] sm:$0xff]  ;;  %v1364_v23 = vld [vmem:[%s1830_s7 + $0x20] sm:$0xff] }
   0xe   :  { %1401 = vmatpush.bf16.msra.mxu1 %v1348_v3  ;;  %1402 = vmatpush.bf16.msra.mxu2 %v1348_v3  ;;  %v1382_v17 = vld [vmem:[%s1831_s8 + $0x30] sm:$0xff]  ;;  %v1333_v21 = vld [vmem:[%s1828_s5 + $0x28] sm:$0xff]  ;;  %v1332_v24 = vld [vmem:[%s1828_s5 + $0x20] sm:$0xff] }
   0xf   :  { %1403 = vmatpush.bf16.msra.mxu3 %v1348_v3  ;;  %206 = vmatpush.bf16.msra.mxu0 %v1348_v3  ;;  %v1381_v22 = vld [vmem:[%s1831_s8 + $0x28] sm:$0xff]  ;;  %v1380_v25 = vld [vmem:[%s1831_s8 + $0x20] sm:$0xff]  ;;  %v1363_v26 = vld [vmem:[%s1830_s7 + $0x18] sm:$0xff] }
  0x10   :  { %v1331_v27 = vld [vmem:[%s1828_s5 + $0x18] sm:$0xff]  ;;  %v1341_v30 = vld [vmem:[%s1824_s1 + $0x28] sm:$0xff]  ;;  %v1362_v32 = vld [vmem:[%s1830_s7 + $0x10] sm:$0xff] }
  0x11   :  { %v1379_v28 = vld [vmem:[%s1831_s8 + $0x18] sm:$0xff]  ;;  %v1330_v33 = vld [vmem:[%s1828_s5 + $0x10] sm:$0xff]  ;;  %v1337_v35 = vld [vmem:[%s1824_s1 + $0x8] sm:$0xff] }
  0x12   :  { %1404 = vmatpush.bf16.msra.mxu1 %v1347_v4  ;;  %1405 = vmatpush.bf16.msra.mxu2 %v1347_v4  ;;  %v1339_v29 = vld [vmem:[%s1824_s1 + $0x18] sm:$0xff]  ;;  %v1378_v34 = vld [vmem:[%s1831_s8 + $0x10] sm:$0xff]  ;;  %v1361_v36 = vld [vmem:[%s1830_s7 + $0x8] sm:$0xff] }
  0x13   :  { %1406 = vmatpush.bf16.msra.mxu3 %v1347_v4  ;;  %207 = vmatpush.bf16.msra.mxu0 %v1347_v4  ;;  %v1343_v31 = vld [vmem:[%s1824_s1 + $0x38] sm:$0xff]  ;;  %v1329_v37 = vld [vmem:[%s1828_s5 + $0x8] sm:$0xff]  ;;  %v1360_v39 = vld [vmem:[%s1830_s7] sm:$0xff]  ;;  %s1448_s1 = smov 128  }
  0x14   :  { %v1377_v38 = vld [vmem:[%s1831_s8 + $0x8] sm:$0xff]  ;;  %v1328_v40 = vld [vmem:[%s1828_s5] sm:$0xff]  ;;  %v1322_v50 = vld [vmem:[%s1823_s0 + $0x10] sm:$0xff] }
  0x15   :  { %v1376_v41 = vld [vmem:[%s1831_s8] sm:$0xff]  ;;  %v1321_v46 = vld [vmem:[%s1823_s0 + $0x8] sm:$0xff]  ;;  %v1354_v51 = vld [vmem:[%s1825_s2 + $0x10] sm:$0xff] }
  0x16   :  { %1407 = vmatpush.bf16.msra.mxu1 %v1346_v5  ;;  %1408 = vmatpush.bf16.msra.mxu2 %v1346_v5  ;;  %v1320_v42 = vld [vmem:[%s1823_s0] sm:$0xff]  ;;  %v1353_v47 = vld [vmem:[%s1825_s2 + $0x8] sm:$0xff]  ;;  %v1370_v52 = vld [vmem:[%s1826_s3 + $0x10] sm:$0xff] }
  0x17   :  { %1409 = vmatpush.bf16.msra.mxu3 %v1346_v5  ;;  %208 = vmatpush.bf16.msra.mxu0 %v1346_v5  ;;  %v1352_v43 = vld [vmem:[%s1825_s2] sm:$0xff]  ;;  %v1369_v48 = vld [vmem:[%s1826_s3 + $0x8] sm:$0xff]  ;;  %v1386_v53 = vld [vmem:[%s1827_s4 + $0x10] sm:$0xff] }
  0x18   :  { %v1368_v44 = vld [vmem:[%s1826_s3] sm:$0xff]  ;;  %v1385_v49 = vld [vmem:[%s1827_s4 + $0x8] sm:$0xff]  ;;  %v1323_v54 = vld [vmem:[%s1823_s0 + $0x18] sm:$0xff] }
  0x19   :  { %v1384_v45 = vld [vmem:[%s1827_s4] sm:$0xff]  ;;  %v1355_v55 = vld [vmem:[%s1825_s2 + $0x18] sm:$0xff]  ;;  %v1325_v62 = vld [vmem:[%s1823_s0 + $0x28] sm:$0xff] }
  0x1a   :  { %1410 = vmatpush.bf16.msra.mxu1 %v1345_v6  ;;  %1411 = vmatpush.bf16.msra.mxu2 %v1345_v6  ;;  %v1371_v56 = vld [vmem:[%s1826_s3 + $0x18] sm:$0xff]  ;;  %v1324_v58 = vld [vmem:[%s1823_s0 + $0x20] sm:$0xff]  ;;  %v1357_v63 = vld [vmem:[%s1825_s2 + $0x28] sm:$0xff] }
  0x1b   :  { %1412 = vmatpush.bf16.msra.mxu3 %v1345_v6  ;;  %209 = vmatpush.bf16.msra.mxu0 %v1345_v6  ;;  %v1387_v57 = vld [vmem:[%s1827_s4 + $0x18] sm:$0xff]  ;;  %v1356_v59 = vld [vmem:[%s1825_s2 + $0x20] sm:$0xff]  ;;  %v1373_v0 = vld [vmem:[%s1826_s3 + $0x28] sm:$0xff] }
  0x1c   :  { %v1372_v60 = vld [vmem:[%s1826_s3 + $0x20] sm:$0xff]  ;;  %v1389_v1 = vld [vmem:[%s1827_s4 + $0x28] sm:$0xff]  ;;  %v1326_v2 = vld [vmem:[%s1823_s0 + $0x30] sm:$0xff] }
  0x1d   :  { %v1388_v61 = vld [vmem:[%s1827_s4 + $0x20] sm:$0xff]  ;;  %v1358_v3 = vld [vmem:[%s1825_s2 + $0x30] sm:$0xff] }
  0x1e   :  { %1413 = vmatpush.bf16.msra.mxu1 %v1344_v7  ;;  %1414 = vmatpush.bf16.msra.mxu2 %v1344_v7  ;;  %v1374_v5 = vld [vmem:[%s1826_s3 + $0x30] sm:$0xff] }
  0x1f   :  { %1415 = vmatpush.bf16.msra.mxu3 %v1344_v7  ;;  %210 = vmatpush.bf16.msra.mxu0 %v1344_v7  ;;  %v1390_v6 = vld [vmem:[%s1827_s4 + $0x30] sm:$0xff] }
  0x21   :  { %221 = vmatmul.bf16.vlgmr.msra.gmra.mxu1 %v1338_v11  ;;  %231 = vmatmul.bf16.vlgmr.msra.gmra.mxu2 %v1340_v12 }
  0x22   :  { %525 = vmatpush.bf16.msrb.mxu2 %v1367_v8  ;;  %348 = vmatpush.bf16.msrb.mxu1 %v1335_v9 }
  0x23   :  { %718 = vmatpush.bf16.msrb.mxu3 %v1383_v10  ;;  %912 = vmatpush.bf16.msrb.mxu0 %v903_v18  ;;  %v1391_v18 = vld [vmem:[%s1827_s4 + $0x38] sm:$0xff] }
  0x24   :  { %241 = vmatmul.bf16.vlgmr.msra.gmra.mxu3 %v1342_v14  ;;  %211 = vmatmul.bf16.vlgmr.msra.gmra.mxu0 %v1336_v19  ;;  %v1327_v14 = vld [vmem:[%s1823_s0 + $0x38] sm:$0xff] }
  0x26   :  { %526 = vmatpush.bf16.msrb.mxu2 %v1366_v15  ;;  %349 = vmatpush.bf16.msrb.mxu1 %v1334_v16  ;;  %v1359_v15 = vld [vmem:[%s1825_s2 + $0x38] sm:$0xff] }
  0x27   :  { %719 = vmatpush.bf16.msrb.mxu3 %v1382_v17  ;;  %v1375_v17 = vld [vmem:[%s1826_s3 + $0x38] sm:$0xff] }
  0x2a   :  { %527 = vmatpush.bf16.msrb.mxu2 %v1365_v20  ;;  %350 = vmatpush.bf16.msrb.mxu1 %v1333_v21 }
  0x2b   :  { %720 = vmatpush.bf16.msrb.mxu3 %v1381_v22 }
  0x2e   :  { %528 = vmatpush.bf16.msrb.mxu2 %v1364_v23  ;;  %351 = vmatpush.bf16.msrb.mxu1 %v1332_v24 }
  0x2f   :  { %721 = vmatpush.bf16.msrb.mxu3 %v1380_v25 }
  0x31   :  { %226 = vmatmul.bf16.gmra.mxu1 %v1339_v29  ;;  %236 = vmatmul.bf16.gmra.mxu2 %v1341_v30 }
  0x32   :  { %529 = vmatpush.bf16.msrb.mxu2 %v1363_v26  ;;  %352 = vmatpush.bf16.msrb.mxu1 %v1331_v27 }
  0x33   :  { %722 = vmatpush.bf16.msrb.mxu3 %v1379_v28 }
  0x34   :  { %246 = vmatmul.bf16.gmra.mxu3 %v1343_v31  ;;  %216 = vmatmul.bf16.gmra.mxu0 %v1337_v35 }
  0x36   :  { %530 = vmatpush.bf16.msrb.mxu2 %v1362_v32  ;;  %353 = vmatpush.bf16.msrb.mxu1 %v1330_v33  ;;  %v1769_v32 = vld [vmem:[%s1833_s10] ss:$0 sm:$0xff]  ;;  %s1447_s10 = smov [#allocation2]  }
  0x37   :  { %723 = vmatpush.bf16.msrb.mxu3 %v1378_v34 }
  0x3a   :  { %531 = vmatpush.bf16.msrb.mxu2 %v1361_v36  ;;  %354 = vmatpush.bf16.msrb.mxu1 %v1329_v37 }
  0x3b   :  { %724 = vmatpush.bf16.msrb.mxu3 %v1377_v38  ;;  %v1775_v38 = vld [vmem:[%s1834_s11] ss:$0 sm:$0xff]  ;;  %s1010_s11 = sshll.u32 %s1447_s10, 4  ;;  %s1011_s11 = int_to_ptr.vmem [resolvable:$true] %s1010_s11 }
  0x3e   :  { %532 = vmatpush.bf16.msrb.mxu2 %v1360_v39  ;;  %355 = vmatpush.bf16.msrb.mxu1 %v1328_v40 }
  0x3f   :  { %725 = vmatpush.bf16.msrb.mxu3 %v1376_v41 }
  0x41   :  { %356 = vmatmul.bf16.vlgmr.msrb.gmra.mxu1 %v1320_v42  ;;  %533 = vmatmul.bf16.vlgmr.msrb.gmra.mxu2 %v1352_v43 }
  0x44   :  { %726 = vmatmul.bf16.vlgmr.msrb.gmra.mxu3 %v1368_v44  ;;  %1312 = vmatmul.msk.bf16.vlgmr.msrb.gmra.mxu0 %vm876_vm1, %v1384_v45 }
  0x51   :  { %361 = vmatmul.bf16.gmra.mxu1 %v1321_v46  ;;  %538 = vmatmul.bf16.gmra.mxu2 %v1353_v47 }
  0x54   :  { %731 = vmatmul.bf16.gmra.mxu3 %v1369_v48  ;;  %1313 = vmatmul.msk.bf16.gmra.mxu0 %vm876_vm1, %v1385_v49 }
  0x61   :  { %366 = vmatmul.bf16.gmra.mxu1 %v1322_v50  ;;  %543 = vmatmul.bf16.gmra.mxu2 %v1354_v51 }
  0x64   :  { %736 = vmatmul.bf16.gmra.mxu3 %v1370_v52  ;;  %1314 = vmatmul.msk.bf16.gmra.mxu0 %vm876_vm1, %v1386_v53 }
  0x71   :  { %371 = vmatmul.bf16.gmra.mxu1 %v1323_v54  ;;  %548 = vmatmul.bf16.gmra.mxu2 %v1355_v55 }
  0x74   :  { %741 = vmatmul.bf16.gmra.mxu3 %v1371_v56  ;;  %1315 = vmatmul.msk.bf16.gmra.mxu0 %vm876_vm1, %v1387_v57 }
  0x81   :  { %376 = vmatmul.bf16.gmra.mxu1 %v1324_v58  ;;  %553 = vmatmul.bf16.gmra.mxu2 %v1356_v59 }
  0x84   :  { %746 = vmatmul.bf16.gmra.mxu3 %v1372_v60  ;;  %1316 = vmatmul.msk.bf16.gmra.mxu0 %vm876_vm1, %v1388_v61 }
  0x91   :  { %381 = vmatmul.bf16.gmra.mxu1 %v1325_v62  ;;  %558 = vmatmul.bf16.gmra.mxu2 %v1357_v63 }
  0x94   :  { %751 = vmatmul.bf16.gmra.mxu3 %v1373_v0  ;;  %1317 = vmatmul.msk.bf16.gmra.mxu0 %vm876_vm1, %v1389_v1 }
  0x9e   :  { %v1722_v4 = vpop.f32.mrf.mxu1 }
  0xa1   :  { %386 = vmatmul.bf16.gmra.mxu1 %v1326_v2  ;;  %563 = vmatmul.bf16.gmra.mxu2 %v1358_v3  ;;  %v212_v7 = vpop.f32.mrf.mxu0 }
  0xa4   :  { %756 = vmatmul.bf16.gmra.mxu3 %v1374_v5  ;;  %v1730_v8 = vpop.f32.mrf.mxu2  ;;  %1318 = vmatmul.msk.bf16.gmra.mxu0 %vm876_vm1, %v1390_v6 }
  0xa6   :  { %v1735_v10 = vpop.f32.mrf.mxu1 }
  0xa7   :  { %v1732_v9 = vpop.f32.mrf.mxu3 }
  0xa9   :  { %v214_v11 = vpop.f32.mrf.mxu0 }
  0xac   :  { %v1737_v12 = vpop.f32.mrf.mxu2 }
  0xae   :  { %v1747_v16 = vpop.f32.mrf.mxu1 }
  0xaf   :  { %v1739_v13 = vpop.f32.mrf.mxu3 }
  0xb1   :  { %391 = vmatmul.bf16.gmra.mxu1 %v1327_v14  ;;  %568 = vmatmul.bf16.gmra.mxu2 %v1359_v15  ;;  %v217_v19 = vpop.f32.mrf.mxu0 }
  0xb4   :  { %761 = vmatmul.bf16.gmra.mxu3 %v1375_v17  ;;  %v1755_v20 = vpop.f32.mrf.mxu2  ;;  %1319 = vmatmul.msk.bf16.gmra.mxu0 %vm876_vm1, %v1391_v18 }
  0xb6   :  { %v1760_v22 = vpop.f32.mrf.mxu1 }
  0xb7   :  { %v1757_v21 = vpop.f32.mrf.mxu3 }
  0xb9   :  { %v219_v23 = vpop.f32.mrf.mxu0 }
  0xbc   :  { %v1762_v24 = vpop.f32.mrf.mxu2 }
  0xbe   :  { %v357_v26 = vpop.f32.mrf.mxu1 }
  0xbf   :  { %v1764_v25 = vpop.f32.mrf.mxu3  ;;  %v358_v28 = vadd.f32 %v357_v26, %v212_v7 }
  0xc1   :  { %v914_v27 = vpop.f32.mrf.mxu0 }
  0xc4   :  { %v534_v29 = vpop.f32.mrf.mxu2 }
  0xc5   :  { %v574_v30 = vadd.f32 %v534_v29, %v358_v28 }
  0xc6   :  { %v359_v33 = vpop.f32.mrf.mxu1 }
  0xc7   :  { %v727_v31 = vpop.f32.mrf.mxu3  ;;  %v360_v39 = vadd.f32 %v359_v33, %v214_v11 }
  0xc8   :  { %v767_v34 = vadd.f32 %v727_v31, %v574_v30 }
  0xc9   :  { %v916_v36 = vpop.f32.mrf.mxu0 }
  0xca   :  { %v787_v35 = vadd.f32 %v1769_v32, %v767_v34 }
  0xcc   :  { %v803_v37 = vmax.f32 %v787_v35, 0.0  ;;  %v536_v40 = vpop.f32.mrf.mxu2 }
  0xcd   :  { %v575_v42 = vadd.f32 %v536_v40, %v360_v39 }
  0xce   :  { %v954_v41 = vadd.f32 %v914_v27, %v803_v37  ;;  %v362_v44 = vpop.f32.mrf.mxu1 }
  0xcf   :  { %v729_v43 = vpop.f32.mrf.mxu3  ;;  %v363_v50 = vadd.f32 %v362_v44, %v217_v19 }
  0xd0   :  { %v974_v45 = vadd.f32 %v1775_v38, %v954_v41  ;;  %v768_v46 = vadd.f32 %v729_v43, %v575_v42 }
  0xd1   :  { %v919_v48 = vpop.f32.mrf.mxu0 }
  0xd2   :  { %990 = vst [vmem:[#allocation2] sm:$0xff] %v974_v45  ;;  %v788_v47 = vadd.f32 %v1769_v32, %v768_v46 }
  0xd4   :  { %v804_v49 = vmax.f32 %v788_v47, 0.0  ;;  %v539_v51 = vpop.f32.mrf.mxu2 }
  0xd5   :  { %v576_v53 = vadd.f32 %v539_v51, %v363_v50 }
  0xd6   :  { %v955_v52 = vadd.f32 %v916_v36, %v804_v49  ;;  %v364_v55 = vpop.f32.mrf.mxu1 }
  0xd7   :  { %v732_v54 = vpop.f32.mrf.mxu3  ;;  %v365_v61 = vadd.f32 %v364_v55, %v219_v23 }
  0xd8   :  { %v975_v56 = vadd.f32 %v1775_v38, %v955_v52  ;;  %v769_v57 = vadd.f32 %v732_v54, %v576_v53 }
  0xd9   :  { %v921_v59 = vpop.f32.mrf.mxu0 }
  0xda   :  { %991 = vst [vmem:[#allocation2 + $0x8] sm:$0xff] %v975_v56  ;;  %v789_v58 = vadd.f32 %v1769_v32, %v769_v57 }
  0xdc   :  { %v805_v60 = vmax.f32 %v789_v58, 0.0  ;;  %v541_v62 = vpop.f32.mrf.mxu2 }
  0xdd   :  { %v577_v0 = vadd.f32 %v541_v62, %v365_v61 }
  0xde   :  { %v956_v63 = vadd.f32 %v919_v48, %v805_v60  ;;  %v367_v2 = vpop.f32.mrf.mxu1 }
  0xdf   :  { %v734_v1 = vpop.f32.mrf.mxu3  ;;  %v368_v14 = vadd.f32 %v367_v2, %v1722_v4 }
  0xe0   :  { %v976_v3 = vadd.f32 %v1775_v38, %v956_v63  ;;  %v770_v5 = vadd.f32 %v734_v1, %v577_v0 }
  0xe1   :  { %v924_v7 = vpop.f32.mrf.mxu0 }
  0xe2   :  { %992 = vst [vmem:[#allocation2 + $0x10] sm:$0xff] %v976_v3  ;;  %v790_v6 = vadd.f32 %v1769_v32, %v770_v5 }
  0xe4   :  { %v806_v11 = vmax.f32 %v790_v6, 0.0  ;;  %v544_v15 = vpop.f32.mrf.mxu2 }
  0xe5   :  { %v578_v18 = vadd.f32 %v544_v15, %v368_v14 }
  0xe6   :  { %v957_v17 = vadd.f32 %v921_v59, %v806_v11  ;;  %v369_v23 = vpop.f32.mrf.mxu1 }
  0xe7   :  { %v737_v19 = vpop.f32.mrf.mxu3  ;;  %v370_v31 = vadd.f32 %v369_v23, %v1735_v10 }
  0xe8   :  { %v977_v26 = vadd.f32 %v1775_v38, %v957_v17  ;;  %v771_v27 = vadd.f32 %v737_v19, %v578_v18 }
  0xe9   :  { %v926_v29 = vpop.f32.mrf.mxu0 }
  0xea   :  { %993 = vst [vmem:[#allocation2 + $0x18] sm:$0xff] %v977_v26  ;;  %v791_v28 = vadd.f32 %v1769_v32, %v771_v27 }
  0xec   :  { %v807_v30 = vmax.f32 %v791_v28, 0.0  ;;  %v546_v33 = vpop.f32.mrf.mxu2 }
  0xed   :  { %v579_v35 = vadd.f32 %v546_v33, %v370_v31 }
  0xee   :  { %v958_v34 = vadd.f32 %v924_v7, %v807_v30  ;;  %v372_v4 = vpop.f32.mrf.mxu1 }
  0xef   :  { %v739_v36 = vpop.f32.mrf.mxu3  ;;  %v373_v43 = vadd.f32 %v372_v4, %v1747_v16 }
  0xf0   :  { %v978_v37 = vadd.f32 %v1775_v38, %v958_v34  ;;  %v772_v39 = vadd.f32 %v739_v36, %v579_v35 }
  0xf1   :  { %v929_v41 = vpop.f32.mrf.mxu0 }
  0xf2   :  { %994 = vst [vmem:[#allocation2 + $0x20] sm:$0xff] %v978_v37  ;;  %v792_v40 = vadd.f32 %v1769_v32, %v772_v39 }
  0xf4   :  { %v808_v42 = vmax.f32 %v792_v40, 0.0  ;;  %v549_v44 = vpop.f32.mrf.mxu2 }
  0xf5   :  { %v580_v46 = vadd.f32 %v549_v44, %v373_v43 }
  0xf6   :  { %v959_v45 = vadd.f32 %v926_v29, %v808_v42  ;;  %v374_v10 = vpop.f32.mrf.mxu1 }
  0xf7   :  { %v742_v47 = vpop.f32.mrf.mxu3  ;;  %v375_v53 = vadd.f32 %v374_v10, %v1760_v22 }
  0xf8   :  { %v979_v48 = vadd.f32 %v1775_v38, %v959_v45  ;;  %v773_v49 = vadd.f32 %v742_v47, %v580_v46 }
  0xf9   :  { %v931_v51 = vpop.f32.mrf.mxu0 }
  0xfa   :  { %995 = vst [vmem:[#allocation2 + $0x28] sm:$0xff] %v979_v48  ;;  %v793_v50 = vadd.f32 %v1769_v32, %v773_v49 }
  0xfc   :  { %v809_v52 = vmax.f32 %v793_v50, 0.0  ;;  %v551_v54 = vpop.f32.mrf.mxu2 }
  0xfd   :  { %v581_v56 = vadd.f32 %v551_v54, %v375_v53 }
  0xfe   :  { %v960_v55 = vadd.f32 %v929_v41, %v809_v52  ;;  %v377_v16 = vpop.f32.mrf.mxu1 }
  0xff   :  { %v744_v57 = vpop.f32.mrf.mxu3  ;;  %v378_v63 = vadd.f32 %v377_v16, %v1730_v8 }
 0x100   :  { %v980_v58 = vadd.f32 %v1775_v38, %v960_v55  ;;  %v774_v59 = vadd.f32 %v744_v57, %v581_v56 }
 0x101   :  { %v934_v61 = vpop.f32.mrf.mxu0 }
 0x102   :  { %996 = vst [vmem:[#allocation2 + $0x30] sm:$0xff] %v980_v58  ;;  %v794_v60 = vadd.f32 %v1769_v32, %v774_v59 }
 0x104   :  { %v810_v62 = vmax.f32 %v794_v60, 0.0  ;;  %v554_v0 = vpop.f32.mrf.mxu2 }
 0x105   :  { %v582_v2 = vadd.f32 %v554_v0, %v378_v63 }
 0x106   :  { %v961_v1 = vadd.f32 %v931_v51, %v810_v62  ;;  %v379_v22 = vpop.f32.mrf.mxu1 }
 0x107   :  { %v747_v3 = vpop.f32.mrf.mxu3  ;;  %v380_v15 = vadd.f32 %v379_v22, %v1737_v12 }
 0x108   :  { %v981_v5 = vadd.f32 %v1775_v38, %v961_v1  ;;  %v775_v6 = vadd.f32 %v747_v3, %v582_v2 }
 0x109   :  { %v936_v11 = vpop.f32.mrf.mxu0 }
 0x10a   :  { %997 = vst [vmem:[#allocation2 + $0x38] sm:$0xff] %v981_v5  ;;  %v795_v7 = vadd.f32 %v1769_v32, %v775_v6 }
 0x10c   :  { %v811_v14 = vmax.f32 %v795_v7, 0.0  ;;  %v556_v17 = vpop.f32.mrf.mxu2 }
 0x10d   :  { %v583_v19 = vadd.f32 %v556_v17, %v380_v15 }
 0x10e   :  { %v962_v18 = vadd.f32 %v934_v61, %v811_v14  ;;  %v382_v8 = vpop.f32.mrf.mxu1 }
 0x10f   :  { %v749_v23 = vpop.f32.mrf.mxu3  ;;  %v383_v31 = vadd.f32 %v382_v8, %v1755_v20 }
 0x110   :  { %v982_v26 = vadd.f32 %v1775_v38, %v962_v18  ;;  %v776_v27 = vadd.f32 %v749_v23, %v583_v19 }
 0x111   :  { %v939_v29 = vpop.f32.mrf.mxu0 }
 0x112   :  { %998 = vst [vmem:[#allocation2 + $0x40] sm:$0xff] %v982_v26  ;;  %v796_v28 = vadd.f32 %v1769_v32, %v776_v27 }
 0x114   :  { %v812_v30 = vmax.f32 %v796_v28, 0.0  ;;  %v559_v33 = vpop.f32.mrf.mxu2 }
 0x115   :  { %v584_v35 = vadd.f32 %v559_v33, %v383_v31 }
 0x116   :  { %v963_v34 = vadd.f32 %v936_v11, %v812_v30  ;;  %v384_v12 = vpop.f32.mrf.mxu1 }
 0x117   :  { %v752_v36 = vpop.f32.mrf.mxu3  ;;  %v385_v41 = vadd.f32 %v384_v12, %v1762_v24 }
 0x118   :  { %v983_v4 = vadd.f32 %v1775_v38, %v963_v34  ;;  %v777_v37 = vadd.f32 %v752_v36, %v584_v35 }
 0x119   :  { %v941_v43 = vpop.f32.mrf.mxu0 }
 0x11a   :  { %999 = vst [vmem:[#allocation2 + $0x48] sm:$0xff] %v983_v4  ;;  %v797_v39 = vadd.f32 %v1769_v32, %v777_v37 }
 0x11c   :  { %v813_v40 = vmax.f32 %v797_v39, 0.0  ;;  %v561_v42 = vpop.f32.mrf.mxu2 }
 0x11d   :  { %v585_v45 = vadd.f32 %v561_v42, %v385_v41 }
 0x11e   :  { %v964_v44 = vadd.f32 %v939_v29, %v813_v40  ;;  %v387_v20 = vpop.f32.mrf.mxu1 }
 0x11f   :  { %v754_v46 = vpop.f32.mrf.mxu3  ;;  %v388_v50 = vadd.f32 %v387_v20, %v1732_v9 }
 0x120   :  { %v984_v47 = vadd.f32 %v1775_v38, %v964_v44  ;;  %v778_v10 = vadd.f32 %v754_v46, %v585_v45 }
 0x121   :  { %v944_v24 = vpop.f32.mrf.mxu0 }
 0x122   :  { %1000 = vst [vmem:[#allocation2 + $0x50] sm:$0xff] %v984_v47  ;;  %v798_v48 = vadd.f32 %v1769_v32, %v778_v10 }
 0x124   :  { %v814_v49 = vmax.f32 %v798_v48, 0.0  ;;  %v564_v51 = vpop.f32.mrf.mxu2 }
 0x125   :  { %v586_v53 = vadd.f32 %v564_v51, %v388_v50 }
 0x126   :  { %v965_v52 = vadd.f32 %v941_v43, %v814_v49  ;;  %v389_v55 = vpop.f32.mrf.mxu1 }
 0x127   :  { %v757_v54 = vpop.f32.mrf.mxu3  ;;  %v390_v59 = vadd.f32 %v389_v55, %v1739_v13 }
 0x128   :  { %v985_v56 = vadd.f32 %v1775_v38, %v965_v52  ;;  %v779_v57 = vadd.f32 %v757_v54, %v586_v53 }
 0x129   :  { %v946_v2 = vpop.f32.mrf.mxu0 }
 0x12a   :  { %1001 = vst [vmem:[#allocation2 + $0x58] sm:$0xff] %v985_v56  ;;  %v799_v16 = vadd.f32 %v1769_v32, %v779_v57 }
 0x12c   :  { %v815_v58 = vmax.f32 %v799_v16, 0.0  ;;  %v566_v60 = vpop.f32.mrf.mxu2 }
 0x12d   :  { %v587_v62 = vadd.f32 %v566_v60, %v390_v59 }
 0x12e   :  { %v966_v61 = vadd.f32 %v944_v24, %v815_v58  ;;  %v392_v9 = vpop.f32.mrf.mxu1 }
 0x12f   :  { %v759_v63 = vpop.f32.mrf.mxu3  ;;  %v393_v5 = vadd.f32 %v392_v9, %v1757_v21 }
 0x130   :  { %v986_v0 = vadd.f32 %v1775_v38, %v966_v61  ;;  %v780_v1 = vadd.f32 %v759_v63, %v587_v62 }
 0x131   :  { %v949_v19 = vpop.f32.mrf.mxu0 }
 0x132   :  { %1002 = vst [vmem:[#allocation2 + $0x60] sm:$0xff] %v986_v0  ;;  %v800_v3 = vadd.f32 %v1769_v32, %v780_v1 }
 0x134   :  { %v816_v22 = vmax.f32 %v800_v3, 0.0  ;;  %v569_v6 = vpop.f32.mrf.mxu2 }
 0x135   :  { %v588_v11 = vadd.f32 %v569_v6, %v393_v5 }
 0x136   :  { %v967_v7 = vadd.f32 %v946_v2, %v816_v22  ;;  %v394_v17 = vpop.f32.mrf.mxu1 }
 0x137   :  { %v762_v14 = vpop.f32.mrf.mxu3  ;;  %v395_v8 = vadd.f32 %v394_v17, %v1764_v25 }
 0x138   :  { %v987_v13 = vadd.f32 %v1775_v38, %v967_v7  ;;  %v781_v15 = vadd.f32 %v762_v14, %v588_v11 }
 0x139   :  { %v951_v34 = vpop.f32.mrf.mxu0 }
 0x13a   :  { %1003 = vst [vmem:[#allocation2 + $0x68] sm:$0xff] %v987_v13  ;;  %v801_v18 = vadd.f32 %v1769_v32, %v781_v15 }
 0x13c   :  { %v817_v23 = vmax.f32 %v801_v18, 0.0  ;;  %v571_v26 = vpop.f32.mrf.mxu2 }
 0x13d   :  { %v589_v28 = vadd.f32 %v571_v26, %v395_v8 }
 0x13e   :  { %v968_v27 = vadd.f32 %v949_v19, %v817_v23 }
 0x13f   :  { %v764_v29 = vpop.f32.mrf.mxu3 }
 0x140   :  { %v988_v21 = vadd.f32 %v1775_v38, %v968_v27  ;;  %v782_v30 = vadd.f32 %v764_v29, %v589_v28 }
 0x142   :  { %1004 = vst [vmem:[#allocation2 + $0x70] sm:$0xff] %v988_v21  ;;  %v802_v31 = vadd.f32 %v1769_v32, %v782_v30 }
 0x144   :  { %v818_v33 = vmax.f32 %v802_v31, 0.0 }
 0x146   :  { %v969_v35 = vadd.f32 %v951_v34, %v818_v33 }
 0x148   :  { %v989_v25 = vadd.f32 %v1775_v38, %v969_v35 }
 0x14a   :  { %1005 = vst [vmem:[#allocation2 + $0x78] sm:$0xff] %v989_v25 }
 0x14b   :  { %1018 = dma.vmem_to_hbm [thread:$0]  %s1011_s11, 2048, %s1013_s19, [#allocation3], %s1448_s1, %s1448_s1, %s1449_s20  }
 0x14c   :  { %1445 = dma.done.wait [#allocation3], 2048  }
 0x14d   :  { %1446 = vsyncadd [#allocation3], 4294965248 }
 0x14e   :  { %1023 = vsyncpa [#allocation3], 1 }

</bundles_post_ra>
